<compile_context>
chip_gen: v6e
topology: v6e:2x2x1
jax: 0.10.0
libtpu: 0.0.40
codegen_flags: <defaults>
</compile_context>

<pallas_src>
import functools

import jax
import jax.numpy as jnp
from jax.experimental import pallas as pl
from jax.experimental.pallas import tpu as pltpu


# -----------------------------------------------------------------------------
# helpers
# -----------------------------------------------------------------------------
def _round_up(x, m):
    return (x + m - 1) // m * m


def _pick_time_block(t, pref=16):
    # TODO(synk): sweep tb in {8,16,32} (and the unroll factor) per generation.
    tb = min(t, pref)
    while t % tb != 0:
        tb -= 1
    return tb


def _pick_batch_block(bp):
    # Split the recurrence across both v7x TensorCores when there is enough
    # batch; each core gets its own (bb, Hp) carry scratch.
    if bp >= 16 and bp % 16 == 0:
        return bp // 2
    return bp


def _pick_tile(dim, pref, quantum):
    """Largest multiple of `quantum` <= pref that divides `dim`."""
    t = min(dim, pref)
    t = max(quantum, (t // quantum) * quantum)
    while dim % t != 0:
        t -= quantum
    return t


def _vmem_limit_bytes():
    """~half of physical VMEM (64 MiB on v5e/v6e, 32 MiB on v7x), capped."""
    try:
        cap = int(pltpu.get_tpu_info().vmem_capacity_bytes)
    except Exception:
        cap = 128 * 1024 * 1024
    return int(min(96 * 1024 * 1024, max(32 * 1024 * 1024, cap // 2)))


def _pad_gate_cols(w, h, hp):
    """Re-layout gate axis: (..., 4*h) with gates [i|f|g|o] each h wide ->
    (..., 4*hp) with each gate hp wide (zero padded). No-op when hp == h."""
    if hp == h:
        return w
    lead = w.shape[:-1]
    w4 = w.reshape(lead + (4, h))
    w4 = jnp.pad(w4, [(0, 0)] * len(lead) + [(0, 0), (0, hp - h)])
    return w4.reshape(lead + (4 * hp,))


# -----------------------------------------------------------------------------
# Kernel 1: LSTM recurrence only (gates_x precomputed outside).
# PyTorch gate order (i, f, g, o) preserved; gate stride = hp.
# -----------------------------------------------------------------------------
def lstm_kernel(gx_ref, h0_ref, whh_ref, h_out_ref, h_sc, c_sc, *, tb, hp, unroll):
    @pl.when(pl.program_id(1) == 0)
    def _():
        # Initial hidden state from the encoder; cell state zeros (matches
        # `cell = zeros(num_layers, B, H)` in the PyTorch forward).
        h_sc[...] = h0_ref[...]
        c_sc[...] = jnp.zeros_like(c_sc)

    def step(i, carry):
        h, c = carry
        # Only the truly sequential part lives here: gates = gates_x[t] + h @ W_hh^T
        # bf16 MXU operands, f32 accumulation / gate math.
        gates = gx_ref[i] + jnp.dot(h.astype(whh_ref.dtype), whh_ref[...],
                                    preferred_element_type=jnp.float32)
        i_g = jax.nn.sigmoid(gates[:, 0 * hp:1 * hp])
        f_g = jax.nn.sigmoid(gates[:, 1 * hp:2 * hp])
        g_g = jnp.tanh(gates[:, 2 * hp:3 * hp])
        o_g = jax.nn.sigmoid(gates[:, 3 * hp:4 * hp])
        c = f_g * c + i_g * g_g
        h = o_g * jnp.tanh(c)
        h_out_ref[i] = h.astype(h_out_ref.dtype)   # bf16 writeback
        return h, c

    h, c = jax.lax.fori_loop(0, tb, step, (h_sc[...], c_sc[...]), unroll=unroll)
    h_sc[...] = h
    c_sc[...] = c


def lstm_recurrence_pallas(gates_x, h0, w_hh, *, tb, bb, vmem_limit, unroll=True):
    """gates_x: (T, Bp, 4*Hp) f32; h0: (Bp, Hp) f32; w_hh: (Hp, 4*Hp) bf16.
    Returns hs: (T, Bp, Hp) bf16."""
    T, Bp, G = gates_x.shape
    Hp = h0.shape[1]
    kernel = functools.partial(lstm_kernel, tb=tb, hp=Hp, unroll=unroll)

    def build(single_buffer_invariants):
        inv_kwargs = ({"pipeline_mode": pl.Buffered(1)}
                      if single_buffer_invariants else {})
        return pl.pallas_call(
            kernel,
            out_shape=jax.ShapeDtypeStruct((T, Bp, Hp), jnp.bfloat16),
            grid_spec=pltpu.PrefetchScalarGridSpec(
                num_scalar_prefetch=0,
                grid=(Bp // bb, T // tb),                 # (batch parallel, time seq)
                in_specs=[
                    pl.BlockSpec((tb, bb, G), lambda b, t: (t, b, 0)),   # gates_x
                    pl.BlockSpec((bb, Hp), lambda b, t: (b, 0), **inv_kwargs),  # h0
                    pl.BlockSpec((Hp, G), lambda b, t: (0, 0), **inv_kwargs),   # W_hh^T
                ],
                out_specs=pl.BlockSpec((tb, bb, Hp), lambda b, t: (t, b, 0)),
                scratch_shapes=[
                    pltpu.VMEM((bb, Hp), jnp.float32),   # h carry (f32)
                    pltpu.VMEM((bb, Hp), jnp.float32),   # c carry (f32)
                ],
            ),
            compiler_params=pltpu.CompilerParams(
                dimension_semantics=("parallel", "arbitrary"),
                vmem_limit_bytes=vmem_limit),
        )

    try:
        return build(True)(gates_x, h0, w_hh)
    except Exception:
        # pipeline_mode / Buffered(1) unsupported on this jax build -> default
        # double-buffering (correctness identical, only VMEM footprint differs).
        return build(False)(gates_x, h0, w_hh)


# -----------------------------------------------------------------------------
# Kernel 2: logits projection as a tiled, fully parallel matmul:
#   (T*Bp, Hp) @ (Hp, Vp) + b -> (T*Bp, Vp)    (Vp multiple of 128: lane-dense)
# bf16 operands, f32 accumulation and bias add.
# -----------------------------------------------------------------------------
def logits_kernel(h_ref, w_ref, b_ref, out_ref):
    acc = jnp.dot(h_ref[...], w_ref[...], preferred_element_type=jnp.float32)
    out_ref[...] = (acc + b_ref[...]).astype(out_ref.dtype)


def logits_matmul_pallas(h2d, w, b, *, vmem_limit, out_dtype=jnp.float32):
    M, K = h2d.shape
    N = w.shape[1]
    tm = _pick_tile(M, 512, 8)
    tn = _pick_tile(N, 1024, 128)
    # TODO(synk): on v7x, if the profiler shows only one TC busy, mark the M
    # grid axis pltpu.CORE_PARALLEL instead of "parallel".
    return pl.pallas_call(
        logits_kernel,
        out_shape=jax.ShapeDtypeStruct((M, N), out_dtype),
        grid_spec=pltpu.PrefetchScalarGridSpec(
            num_scalar_prefetch=0,
            grid=(M // tm, N // tn),
            in_specs=[
                pl.BlockSpec((tm, K), lambda i, j: (i, 0)),
                pl.BlockSpec((K, tn), lambda i, j: (0, j)),
                pl.BlockSpec((1, tn), lambda i, j: (0, j)),
            ],
            out_specs=pl.BlockSpec((tm, tn), lambda i, j: (i, j)),
        ),
        compiler_params=pltpu.CompilerParams(
            dimension_semantics=("parallel", "parallel"),
            vmem_limit_bytes=vmem_limit),
    )(h2d, w, b)


# -----------------------------------------------------------------------------
# Parameter re-layout: split W_ih into emb/vis parts; optionally align gates
# to 128-lane tiles (only when H >= 128); pad H -> Hp, V -> Vp with zeros
# (padding is numerically inert: zero W_ih/W_hh/W_out pad rows/cols keep the
# padded h lanes at 0).  MXU-side weights cast to `matmul_dtype`.
# -----------------------------------------------------------------------------
def prepare_params(params, emb_dim, scale_vis, H, Hp, V, Vp, matmul_dtype):
    w_ih_t = params["w_ih_t"]                           # (E+S, 4H), order [emb, vis]
    w_ih_emb_t = _pad_gate_cols(w_ih_t[:emb_dim], H, Hp)                      # (E, 4Hp)
    w_ih_vis_t = _pad_gate_cols(w_ih_t[emb_dim:emb_dim + scale_vis], H, Hp)   # (S, 4Hp)
    b_lstm = _pad_gate_cols(params["b_lstm"], H, Hp)                          # (1, 4Hp)

    w_hh = _pad_gate_cols(params["w_hh_t"], H, Hp)                            # (H, 4Hp)
    w_hh = jnp.pad(w_hh, ((0, Hp - H), (0, 0))).astype(matmul_dtype)          # (Hp, 4Hp)

    w_out = jnp.pad(params["w_out_t"],
                    ((0, Hp - H), (0, Vp - V))).astype(matmul_dtype)          # (Hp, Vp)
    b_out = jnp.pad(params["b_out"], ((0, 0), (0, Vp - V)))                   # (1, Vp)

    return {"w_ih_emb_t": w_ih_emb_t, "w_ih_vis_t": w_ih_vis_t,
            "w_hh_t": w_hh, "b_lstm": b_lstm, "w_out_t": w_out, "b_out": b_out}


# -----------------------------------------------------------------------------
# QGenSeq2Seq forward (plain-JAX glue around the two Pallas kernels).
# -----------------------------------------------------------------------------
def qgen_forward(params, src_q, encoder_hidden, visual_features, max_tgt_length,
                 *, matmul_dtype=jnp.bfloat16, logits_dtype=jnp.float32):
    B, L, H = encoder_hidden.shape
    assert L == 1, "kernel implements num_layers=1 (matches the module's own forward)"
    T = max_tgt_length
    E = params["embedding"].shape[1]
    S = params["w_vis_t"].shape[1]
    V = params["w_out_t"].shape[1]

    # Gate stride / hidden padding: re-layout each gate onto its own 128-lane
    # tile only when H >= 128 (no-op when H % 128 == 0). For small H keep
    # gates packed and slice within the tile (4x less recurrence data movement).
    Hp = H if H < 128 else _round_up(H, 128)
    Vp = _round_up(V, 128)       # lane-dense logits stores
    Bp = _round_up(B, 8)         # full sublane tiles

    vmem_limit = _vmem_limit_bytes()
    pp = prepare_params(params, E, S, H, Hp, V, Vp, matmul_dtype)

    # Embedding lookup (padding_idx row of the table is zero).
    emb = params["embedding"][src_q]                                        # (B, T, E)
    # proj_visual_features = ReLU(scale_visual_to(visual_features))
    proj_vis = jnp.maximum(
        visual_features @ params["w_vis_t"] + params["b_vis"], 0.0)         # (B, S)

    # Pad the (cheap, narrow) operands before the matmuls so gates_x comes out
    # directly in (T, Bp, 4Hp) layout — no post-hoc transpose/pad pass.
    emb = jnp.pad(emb, ((0, Bp - B), (0, 0), (0, 0)))                       # (Bp, T, E)
    proj_vis = jnp.pad(proj_vis, ((0, Bp - B), (0, 0)))                     # (Bp, S)

    # Hoisted input projection (f32 gate pre-activations):
    #   time-invariant visual part + LSTM bias folded into a per-batch bias.
    gates_vis = proj_vis @ pp["w_ih_vis_t"] + pp["b_lstm"]                  # (Bp, 4Hp)
    gates_x = (jnp.einsum("bte,eg->tbg", emb, pp["w_ih_emb_t"])
               + gates_vis[None, :, :])                                     # (T, Bp, 4Hp)

    h0 = jnp.pad(encoder_hidden[:, 0, :], ((0, Bp - B), (0, Hp - H)))       # (Bp, Hp)

    tb = _pick_time_block(T)
    bb = _pick_batch_block(Bp)
    hs = lstm_recurrence_pallas(gates_x, h0, pp["w_hh_t"],
                                tb=tb, bb=bb, vmem_limit=vmem_limit)        # (T,Bp,Hp) bf16

    logits = logits_matmul_pallas(hs.reshape(T * Bp, Hp), pp["w_out_t"], pp["b_out"],
                                  vmem_limit=vmem_limit, out_dtype=logits_dtype)
    logits = logits.reshape(T, Bp, Vp)[:, :B, :V]                           # strip padding
    return jnp.transpose(logits, (1, 0, 2))                                 # (B, T, V)


# -----------------------------------------------------------------------------
# Pure-JAX f32 reference (same math, unpadded) for a correctness check.
# -----------------------------------------------------------------------------
def qgen_forward_ref(params, src_q, encoder_hidden, visual_features, max_tgt_length):
    B = encoder_hidden.shape[0]
    H = encoder_hidden.shape[2]
    emb = params["embedding"][src_q]
    proj_vis = jnp.maximum(visual_features @ params["w_vis_t"] + params["b_vis"], 0.0)
    x = jnp.concatenate(
        [emb, jnp.broadcast_to(proj_vis[:, None, :],
                               (B, max_tgt_length, proj_vis.shape[1]))], axis=2)
    x_tbd = jnp.transpose(x, (1, 0, 2))

    def step(carry, x_t):
        h, c = carry
        gates = x_t @ params["w_ih_t"] + h @ params["w_hh_t"] + params["b_lstm"][0]
        i_g = jax.nn.sigmoid(gates[:, 0 * H:1 * H])
        f_g = jax.nn.sigmoid(gates[:, 1 * H:2 * H])
        g_g = jnp.tanh(gates[:, 2 * H:3 * H])
        o_g = jax.nn.sigmoid(gates[:, 3 * H:4 * H])
        c_new = f_g * c + i_g * g_g
        h_new = o_g * jnp.tanh(c_new)
        return (h_new, c_new), h_new

    h0 = encoder_hidden[:, 0, :]
    c0 = jnp.zeros_like(h0)
    _, hs = jax.lax.scan(step, (h0, c0), x_tbd)           # (T, B, H)
    logits = hs @ params["w_out_t"] + params["b_out"][0]  # (T, B, V)
    return jnp.transpose(logits, (1, 0, 2))


# -----------------------------------------------------------------------------
# Deterministic synthetic parameter init (matches module __init__ shapes).
# -----------------------------------------------------------------------------
def make_params(key, vocab_size, emb_dim, vis_dim, scale_vis, hidden_dim, pad_token):
    ks = jax.random.split(key, 10)
    D = emb_dim + scale_vis
    scale = 0.1
    embedding = scale * jax.random.normal(ks[0], (vocab_size, emb_dim), jnp.float32)
    embedding = embedding.at[pad_token].set(0.0)  # padding_idx
    return {
        "embedding": embedding,
        # scale_visual_to: Linear(vis_dim -> scale_vis); stored pre-transposed.
        "w_vis_t": scale * jax.random.normal(ks[1], (vis_dim, scale_vis), jnp.float32),
        "b_vis":   scale * jax.random.normal(ks[2], (scale_vis,), jnp.float32),
        # LSTM weights (PyTorch: weight_ih [4H, D], weight_hh [4H, H]); pre-transposed.
        "w_ih_t":  scale * jax.random.normal(ks[3], (D, 4 * hidden_dim), jnp.float32),
        "w_hh_t":  scale * jax.random.normal(ks[4], (hidden_dim, 4 * hidden_dim), jnp.float32),
        "b_lstm": (scale * jax.random.normal(ks[5], (1, 4 * hidden_dim), jnp.float32)
                   + scale * jax.random.normal(ks[6], (1, 4 * hidden_dim), jnp.float32)),
        # to_logits: Linear(hidden -> vocab); pre-transposed.
        "w_out_t": scale * jax.random.normal(ks[7], (hidden_dim, vocab_size), jnp.float32),
        "b_out":   scale * jax.random.normal(ks[8], (1, vocab_size), jnp.float32),
    }


if __name__ == "__main__":
    # Small config consistent with the module's kwargs.
    VOCAB = 64
    EMB = 16
    VIS_DIM = 48
    SCALE_VIS = 16
    HIDDEN = 32
    MAX_TGT_LEN = 8
    PAD = 0
    B = 4

    key = jax.random.PRNGKey(0)
    k_params, k_q, k_enc, k_vis = jax.random.split(key, 4)

    params = make_params(k_params, VOCAB, EMB, VIS_DIM, SCALE_VIS, HIDDEN, PAD)

    src_q = jax.random.randint(k_q, (B, MAX_TGT_LEN), 0, VOCAB, dtype=jnp.int32)
    encoder_hidden = 0.1 * jax.random.normal(k_enc, (B, 1, HIDDEN), jnp.float32)
    visual_features = jax.random.normal(k_vis, (B, VIS_DIM), jnp.float32)

    out = qgen_forward(params, src_q, encoder_hidden, visual_features, MAX_TGT_LEN)
    out = jax.block_until_ready(out)

    ref = qgen_forward_ref(params, src_q, encoder_hidden, visual_features, MAX_TGT_LEN)
    assert out.shape == (B, MAX_TGT_LEN, VOCAB), out.shape
    # Tolerance loosened vs. the pure-f32 version: bf16 MXU operands (W_hh, hs,
    # W_out) introduce ~0.2-0.4% relative error; gate math / carries stay f32.
    err = float(jnp.max(jnp.abs(out.astype(jnp.float32) - ref)))
    assert jnp.allclose(out.astype(jnp.float32), ref, atol=2e-2, rtol=2e-2), err

    print("KERNEL_OK")
</pallas_src>

<mosaic_0001>
module attributes {stable_mosaic.version = 11 : i64} {
  func.func @lstm_kernel(%arg0: i32, %arg1: i32, %arg2: memref<8x8x128xf32, #tpu.memory_space<vmem>>, %arg3: memref<8x32xf32, #tpu.memory_space<vmem>>, %arg4: memref<32x128xbf16, #tpu.memory_space<vmem>>, %arg5: memref<8x8x32xbf16, #tpu.memory_space<vmem>>, %arg6: memref<8x32xf32, #tpu.memory_space<vmem>>, %arg7: memref<8x32xf32, #tpu.memory_space<vmem>>) attributes {dimension_semantics = [#tpu.dimension_semantics<parallel>, #tpu.dimension_semantics<arbitrary>], iteration_bounds = array<i64: 1, 1>, scalar_prefetch = 0 : i64, scratch_operands = 2 : i64, tpu.core_type = #tpu.core_type<tc>, window_params = [{transform_indices = @transform_0, window_bounds = array<i64: 8, 8, 128>}, {pipeline_mode = #tpu.pipeline_mode<synchronous>, transform_indices = @transform_1, window_bounds = array<i64: 8, 32>}, {pipeline_mode = #tpu.pipeline_mode<synchronous>, transform_indices = @transform_2, window_bounds = array<i64: 32, 128>}, {transform_indices = @transform_3, window_bounds = array<i64: 8, 8, 32>}]} {
    %c0_i32 = arith.constant 0 : i32
    %0 = arith.cmpi eq, %arg1, %c0_i32 : i32
    %1 = arith.extui %0 : i1 to i32
    %c0_i32_0 = arith.constant 0 : i32
    %2 = arith.cmpi ne, %1, %c0_i32_0 : i32
    scf.if %2 {
      %c0_88 = arith.constant 0 : index
      %c0_89 = arith.constant 0 : index
      %303 = vector.load %arg3[%c0_88, %c0_89] : memref<8x32xf32, #tpu.memory_space<vmem>>, vector<8x32xf32>
      %c0_90 = arith.constant 0 : index
      %c0_91 = arith.constant 0 : index
      %304 = vector.load %arg6[%c0_90, %c0_91] : memref<8x32xf32, #tpu.memory_space<vmem>>, vector<8x32xf32>
      tpu.vector_store %arg6[%c0_90, %c0_91], %303 {strides = array<i32>} : memref<8x32xf32, #tpu.memory_space<vmem>>, vector<8x32xf32>,
      %cst_92 = arith.constant 0.000000e+00 : f32
      %305 = vector.broadcast %cst_92 : f32 to vector<8x32xf32>
      %c0_93 = arith.constant 0 : index
      %c0_94 = arith.constant 0 : index
      %306 = vector.load %arg7[%c0_93, %c0_94] : memref<8x32xf32, #tpu.memory_space<vmem>>, vector<8x32xf32>
      tpu.vector_store %arg7[%c0_93, %c0_94], %305 {strides = array<i32>} : memref<8x32xf32, #tpu.memory_space<vmem>>, vector<8x32xf32>,
    } else {
    }
    %c0 = arith.constant 0 : index
    %c0_1 = arith.constant 0 : index
    %3 = vector.load %arg6[%c0, %c0_1] : memref<8x32xf32, #tpu.memory_space<vmem>>, vector<8x32xf32>
    %c0_2 = arith.constant 0 : index
    %c0_3 = arith.constant 0 : index
    %4 = vector.load %arg7[%c0_2, %c0_3] : memref<8x32xf32, #tpu.memory_space<vmem>>, vector<8x32xf32>
    %c0_i32_4 = arith.constant 0 : i32
    %5 = arith.index_cast %c0_i32_4 : i32 to index
    %c0_5 = arith.constant 0 : index
    %c0_6 = arith.constant 0 : index
    %6 = vector.load %arg2[%5, %c0_5, %c0_6] : memref<8x8x128xf32, #tpu.memory_space<vmem>>, vector<1x8x128xf32>
    %7 = vector.shape_cast %6 : vector<1x8x128xf32> to vector<8x128xf32>
    %8 = arith.truncf %3 : vector<8x32xf32> to vector<8x32xbf16>
    %c0_7 = arith.constant 0 : index
    %c0_8 = arith.constant 0 : index
    %9 = vector.load %arg4[%c0_7, %c0_8] : memref<32x128xbf16, #tpu.memory_space<vmem>>, vector<32x128xbf16>
    %cst = arith.constant dense<0.000000e+00> : vector<8x128xf32>
    %10 = tpu.matmul %8, %9, %cst {dimension_numbers = #tpu.dot_dimension_numbers<[1], [0], [0], [1], [0, 0, 1, 1], [], []>} : vector<8x32xbf16>, vector<32x128xbf16>, vector<8x128xf32> -> vector<8x128xf32>
    %11 = arith.addf %7, %10 : vector<8x128xf32>
    %12 = vector.extract_strided_slice %11 {offsets = [0, 0], sizes = [8, 32], strides = [1, 1]} : vector<8x128xf32> to vector<8x32xf32>
    %13 = arith.negf %12 : vector<8x32xf32>
    %14 = math.exp %13 : vector<8x32xf32>
    %cst_9 = arith.constant 1.000000e+00 : f32
    %15 = vector.broadcast %cst_9 : f32 to vector<8x32xf32>
    %16 = arith.addf %15, %14 : vector<8x32xf32>
    %17 = arith.divf %15, %16 : vector<8x32xf32>
    %18 = vector.extract_strided_slice %11 {offsets = [0, 32], sizes = [8, 32], strides = [1, 1]} : vector<8x128xf32> to vector<8x32xf32>
    %19 = arith.negf %18 : vector<8x32xf32>
    %20 = math.exp %19 : vector<8x32xf32>
    %cst_10 = arith.constant 1.000000e+00 : f32
    %21 = vector.broadcast %cst_10 : f32 to vector<8x32xf32>
    %22 = arith.addf %21, %20 : vector<8x32xf32>
    %23 = arith.divf %21, %22 : vector<8x32xf32>
    %24 = vector.extract_strided_slice %11 {offsets = [0, 64], sizes = [8, 32], strides = [1, 1]} : vector<8x128xf32> to vector<8x32xf32>
    %25 = math.tanh %24 : vector<8x32xf32>
    %26 = vector.extract_strided_slice %11 {offsets = [0, 96], sizes = [8, 32], strides = [1, 1]} : vector<8x128xf32> to vector<8x32xf32>
    %27 = arith.negf %26 : vector<8x32xf32>
    %28 = math.exp %27 : vector<8x32xf32>
    %cst_11 = arith.constant 1.000000e+00 : f32
    %29 = vector.broadcast %cst_11 : f32 to vector<8x32xf32>
    %30 = arith.addf %29, %28 : vector<8x32xf32>
    %31 = arith.divf %29, %30 : vector<8x32xf32>
    %32 = arith.mulf %23, %4 : vector<8x32xf32>
    %33 = arith.mulf %17, %25 : vector<8x32xf32>
    %34 = arith.addf %32, %33 : vector<8x32xf32>
    %35 = math.tanh %34 : vector<8x32xf32>
    %36 = arith.mulf %31, %35 : vector<8x32xf32>
    %37 = arith.truncf %36 : vector<8x32xf32> to vector<8x32xbf16>
    %38 = arith.index_cast %c0_i32_4 : i32 to index
    %c0_12 = arith.constant 0 : index
    %c0_13 = arith.constant 0 : index
    %39 = vector.load %arg5[%38, %c0_12, %c0_13] : memref<8x8x32xbf16, #tpu.memory_space<vmem>>, vector<1x8x32xbf16>
    %40 = vector.shape_cast %39 : vector<1x8x32xbf16> to vector<8x32xbf16>
    %41 = vector.shape_cast %37 : vector<8x32xbf16> to vector<1x8x32xbf16>
    tpu.vector_store %arg5[%38, %c0_12, %c0_13], %41 {strides = array<i32>} : memref<8x8x32xbf16, #tpu.memory_space<vmem>>, vector<1x8x32xbf16>,
    %c1_i32 = arith.constant 1 : i32
    %42 = arith.index_cast %c1_i32 : i32 to index
    %c0_14 = arith.constant 0 : index
    %c0_15 = arith.constant 0 : index
    %43 = vector.load %arg2[%42, %c0_14, %c0_15] : memref<8x8x128xf32, #tpu.memory_space<vmem>>, vector<1x8x128xf32>
    %44 = vector.shape_cast %43 : vector<1x8x128xf32> to vector<8x128xf32>
    %45 = arith.truncf %36 : vector<8x32xf32> to vector<8x32xbf16>
    %c0_16 = arith.constant 0 : index
    %c0_17 = arith.constant 0 : index
    %46 = vector.load %arg4[%c0_16, %c0_17] : memref<32x128xbf16, #tpu.memory_space<vmem>>, vector<32x128xbf16>
    %cst_18 = arith.constant dense<0.000000e+00> : vector<8x128xf32>
    %47 = tpu.matmul %45, %46, %cst_18 {dimension_numbers = #tpu.dot_dimension_numbers<[1], [0], [0], [1], [0, 0, 1, 1], [], []>} : vector<8x32xbf16>, vector<32x128xbf16>, vector<8x128xf32> -> vector<8x128xf32>
    %48 = arith.addf %44, %47 : vector<8x128xf32>
    %49 = vector.extract_strided_slice %48 {offsets = [0, 0], sizes = [8, 32], strides = [1, 1]} : vector<8x128xf32> to vector<8x32xf32>
    %50 = arith.negf %49 : vector<8x32xf32>
    %51 = math.exp %50 : vector<8x32xf32>
    %cst_19 = arith.constant 1.000000e+00 : f32
    %52 = vector.broadcast %cst_19 : f32 to vector<8x32xf32>
    %53 = arith.addf %52, %51 : vector<8x32xf32>
    %54 = arith.divf %52, %53 : vector<8x32xf32>
    %55 = vector.extract_strided_slice %48 {offsets = [0, 32], sizes = [8, 32], strides = [1, 1]} : vector<8x128xf32> to vector<8x32xf32>
    %56 = arith.negf %55 : vector<8x32xf32>
    %57 = math.exp %56 : vector<8x32xf32>
    %cst_20 = arith.constant 1.000000e+00 : f32
    %58 = vector.broadcast %cst_20 : f32 to vector<8x32xf32>
    %59 = arith.addf %58, %57 : vector<8x32xf32>
    %60 = arith.divf %58, %59 : vector<8x32xf32>
    %61 = vector.extract_strided_slice %48 {offsets = [0, 64], sizes = [8, 32], strides = [1, 1]} : vector<8x128xf32> to vector<8x32xf32>
    %62 = math.tanh %61 : vector<8x32xf32>
    %63 = vector.extract_strided_slice %48 {offsets = [0, 96], sizes = [8, 32], strides = [1, 1]} : vector<8x128xf32> to vector<8x32xf32>
    %64 = arith.negf %63 : vector<8x32xf32>
    %65 = math.exp %64 : vector<8x32xf32>
    %cst_21 = arith.constant 1.000000e+00 : f32
    %66 = vector.broadcast %cst_21 : f32 to vector<8x32xf32>
    %67 = arith.addf %66, %65 : vector<8x32xf32>
    %68 = arith.divf %66, %67 : vector<8x32xf32>
    %69 = arith.mulf %60, %34 : vector<8x32xf32>
    %70 = arith.mulf %54, %62 : vector<8x32xf32>
    %71 = arith.addf %69, %70 : vector<8x32xf32>
    %72 = math.tanh %71 : vector<8x32xf32>
    %73 = arith.mulf %68, %72 : vector<8x32xf32>
    %74 = arith.truncf %73 : vector<8x32xf32> to vector<8x32xbf16>
    %75 = arith.index_cast %c1_i32 : i32 to index
    %c0_22 = arith.constant 0 : index
    %c0_23 = arith.constant 0 : index
    %76 = vector.load %arg5[%75, %c0_22, %c0_23] : memref<8x8x32xbf16, #tpu.memory_space<vmem>>, vector<1x8x32xbf16>
    %77 = vector.shape_cast %76 : vector<1x8x32xbf16> to vector<8x32xbf16>
    %78 = vector.shape_cast %74 : vector<8x32xbf16> to vector<1x8x32xbf16>
    tpu.vector_store %arg5[%75, %c0_22, %c0_23], %78 {strides = array<i32>} : memref<8x8x32xbf16, #tpu.memory_space<vmem>>, vector<1x8x32xbf16>,
    %c2_i32 = arith.constant 2 : i32
    %79 = arith.index_cast %c2_i32 : i32 to index
    %c0_24 = arith.constant 0 : index
    %c0_25 = arith.constant 0 : index
    %80 = vector.load %arg2[%79, %c0_24, %c0_25] : memref<8x8x128xf32, #tpu.memory_space<vmem>>, vector<1x8x128xf32>
    %81 = vector.shape_cast %80 : vector<1x8x128xf32> to vector<8x128xf32>
    %82 = arith.truncf %73 : vector<8x32xf32> to vector<8x32xbf16>
    %c0_26 = arith.constant 0 : index
    %c0_27 = arith.constant 0 : index
    %83 = vector.load %arg4[%c0_26, %c0_27] : memref<32x128xbf16, #tpu.memory_space<vmem>>, vector<32x128xbf16>
    %cst_28 = arith.constant dense<0.000000e+00> : vector<8x128xf32>
    %84 = tpu.matmul %82, %83, %cst_28 {dimension_numbers = #tpu.dot_dimension_numbers<[1], [0], [0], [1], [0, 0, 1, 1], [], []>} : vector<8x32xbf16>, vector<32x128xbf16>, vector<8x128xf32> -> vector<8x128xf32>
    %85 = arith.addf %81, %84 : vector<8x128xf32>
    %86 = vector.extract_strided_slice %85 {offsets = [0, 0], sizes = [8, 32], strides = [1, 1]} : vector<8x128xf32> to vector<8x32xf32>
    %87 = arith.negf %86 : vector<8x32xf32>
    %88 = math.exp %87 : vector<8x32xf32>
    %cst_29 = arith.constant 1.000000e+00 : f32
    %89 = vector.broadcast %cst_29 : f32 to vector<8x32xf32>
    %90 = arith.addf %89, %88 : vector<8x32xf32>
    %91 = arith.divf %89, %90 : vector<8x32xf32>
    %92 = vector.extract_strided_slice %85 {offsets = [0, 32], sizes = [8, 32], strides = [1, 1]} : vector<8x128xf32> to vector<8x32xf32>
    %93 = arith.negf %92 : vector<8x32xf32>
    %94 = math.exp %93 : vector<8x32xf32>
    %cst_30 = arith.constant 1.000000e+00 : f32
    %95 = vector.broadcast %cst_30 : f32 to vector<8x32xf32>
    %96 = arith.addf %95, %94 : vector<8x32xf32>
    %97 = arith.divf %95, %96 : vector<8x32xf32>
    %98 = vector.extract_strided_slice %85 {offsets = [0, 64], sizes = [8, 32], strides = [1, 1]} : vector<8x128xf32> to vector<8x32xf32>
    %99 = math.tanh %98 : vector<8x32xf32>
    %100 = vector.extract_strided_slice %85 {offsets = [0, 96], sizes = [8, 32], strides = [1, 1]} : vector<8x128xf32> to vector<8x32xf32>
    %101 = arith.negf %100 : vector<8x32xf32>
    %102 = math.exp %101 : vector<8x32xf32>
    %cst_31 = arith.constant 1.000000e+00 : f32
    %103 = vector.broadcast %cst_31 : f32 to vector<8x32xf32>
    %104 = arith.addf %103, %102 : vector<8x32xf32>
    %105 = arith.divf %103, %104 : vector<8x32xf32>
    %106 = arith.mulf %97, %71 : vector<8x32xf32>
    %107 = arith.mulf %91, %99 : vector<8x32xf32>
    %108 = arith.addf %106, %107 : vector<8x32xf32>
    %109 = math.tanh %108 : vector<8x32xf32>
    %110 = arith.mulf %105, %109 : vector<8x32xf32>
    %111 = arith.truncf %110 : vector<8x32xf32> to vector<8x32xbf16>
    %112 = arith.index_cast %c2_i32 : i32 to index
    %c0_32 = arith.constant 0 : index
    %c0_33 = arith.constant 0 : index
    %113 = vector.load %arg5[%112, %c0_32, %c0_33] : memref<8x8x32xbf16, #tpu.memory_space<vmem>>, vector<1x8x32xbf16>
    %114 = vector.shape_cast %113 : vector<1x8x32xbf16> to vector<8x32xbf16>
    %115 = vector.shape_cast %111 : vector<8x32xbf16> to vector<1x8x32xbf16>
    tpu.vector_store %arg5[%112, %c0_32, %c0_33], %115 {strides = array<i32>} : memref<8x8x32xbf16, #tpu.memory_space<vmem>>, vector<1x8x32xbf16>,
    %c3_i32 = arith.constant 3 : i32
    %116 = arith.index_cast %c3_i32 : i32 to index
    %c0_34 = arith.constant 0 : index
    %c0_35 = arith.constant 0 : index
    %117 = vector.load %arg2[%116, %c0_34, %c0_35] : memref<8x8x128xf32, #tpu.memory_space<vmem>>, vector<1x8x128xf32>
    %118 = vector.shape_cast %117 : vector<1x8x128xf32> to vector<8x128xf32>
    %119 = arith.truncf %110 : vector<8x32xf32> to vector<8x32xbf16>
    %c0_36 = arith.constant 0 : index
    %c0_37 = arith.constant 0 : index
    %120 = vector.load %arg4[%c0_36, %c0_37] : memref<32x128xbf16, #tpu.memory_space<vmem>>, vector<32x128xbf16>
    %cst_38 = arith.constant dense<0.000000e+00> : vector<8x128xf32>
    %121 = tpu.matmul %119, %120, %cst_38 {dimension_numbers = #tpu.dot_dimension_numbers<[1], [0], [0], [1], [0, 0, 1, 1], [], []>} : vector<8x32xbf16>, vector<32x128xbf16>, vector<8x128xf32> -> vector<8x128xf32>
    %122 = arith.addf %118, %121 : vector<8x128xf32>
    %123 = vector.extract_strided_slice %122 {offsets = [0, 0], sizes = [8, 32], strides = [1, 1]} : vector<8x128xf32> to vector<8x32xf32>
    %124 = arith.negf %123 : vector<8x32xf32>
    %125 = math.exp %124 : vector<8x32xf32>
    %cst_39 = arith.constant 1.000000e+00 : f32
    %126 = vector.broadcast %cst_39 : f32 to vector<8x32xf32>
    %127 = arith.addf %126, %125 : vector<8x32xf32>
    %128 = arith.divf %126, %127 : vector<8x32xf32>
    %129 = vector.extract_strided_slice %122 {offsets = [0, 32], sizes = [8, 32], strides = [1, 1]} : vector<8x128xf32> to vector<8x32xf32>
    %130 = arith.negf %129 : vector<8x32xf32>
    %131 = math.exp %130 : vector<8x32xf32>
    %cst_40 = arith.constant 1.000000e+00 : f32
    %132 = vector.broadcast %cst_40 : f32 to vector<8x32xf32>
    %133 = arith.addf %132, %131 : vector<8x32xf32>
    %134 = arith.divf %132, %133 : vector<8x32xf32>
    %135 = vector.extract_strided_slice %122 {offsets = [0, 64], sizes = [8, 32], strides = [1, 1]} : vector<8x128xf32> to vector<8x32xf32>
    %136 = math.tanh %135 : vector<8x32xf32>
    %137 = vector.extract_strided_slice %122 {offsets = [0, 96], sizes = [8, 32], strides = [1, 1]} : vector<8x128xf32> to vector<8x32xf32>
    %138 = arith.negf %137 : vector<8x32xf32>
    %139 = math.exp %138 : vector<8x32xf32>
    %cst_41 = arith.constant 1.000000e+00 : f32
    %140 = vector.broadcast %cst_41 : f32 to vector<8x32xf32>
    %141 = arith.addf %140, %139 : vector<8x32xf32>
    %142 = arith.divf %140, %141 : vector<8x32xf32>
    %143 = arith.mulf %134, %108 : vector<8x32xf32>
    %144 = arith.mulf %128, %136 : vector<8x32xf32>
    %145 = arith.addf %143, %144 : vector<8x32xf32>
    %146 = math.tanh %145 : vector<8x32xf32>
    %147 = arith.mulf %142, %146 : vector<8x32xf32>
    %148 = arith.truncf %147 : vector<8x32xf32> to vector<8x32xbf16>
    %149 = arith.index_cast %c3_i32 : i32 to index
    %c0_42 = arith.constant 0 : index
    %c0_43 = arith.constant 0 : index
    %150 = vector.load %arg5[%149, %c0_42, %c0_43] : memref<8x8x32xbf16, #tpu.memory_space<vmem>>, vector<1x8x32xbf16>
    %151 = vector.shape_cast %150 : vector<1x8x32xbf16> to vector<8x32xbf16>
    %152 = vector.shape_cast %148 : vector<8x32xbf16> to vector<1x8x32xbf16>
    tpu.vector_store %arg5[%149, %c0_42, %c0_43], %152 {strides = array<i32>} : memref<8x8x32xbf16, #tpu.memory_space<vmem>>, vector<1x8x32xbf16>,
    %c4_i32 = arith.constant 4 : i32
    %153 = arith.index_cast %c4_i32 : i32 to index
    %c0_44 = arith.constant 0 : index
    %c0_45 = arith.constant 0 : index
    %154 = vector.load %arg2[%153, %c0_44, %c0_45] : memref<8x8x128xf32, #tpu.memory_space<vmem>>, vector<1x8x128xf32>
    %155 = vector.shape_cast %154 : vector<1x8x128xf32> to vector<8x128xf32>
    %156 = arith.truncf %147 : vector<8x32xf32> to vector<8x32xbf16>
    %c0_46 = arith.constant 0 : index
    %c0_47 = arith.constant 0 : index
    %157 = vector.load %arg4[%c0_46, %c0_47] : memref<32x128xbf16, #tpu.memory_space<vmem>>, vector<32x128xbf16>
    %cst_48 = arith.constant dense<0.000000e+00> : vector<8x128xf32>
    %158 = tpu.matmul %156, %157, %cst_48 {dimension_numbers = #tpu.dot_dimension_numbers<[1], [0], [0], [1], [0, 0, 1, 1], [], []>} : vector<8x32xbf16>, vector<32x128xbf16>, vector<8x128xf32> -> vector<8x128xf32>
    %159 = arith.addf %155, %158 : vector<8x128xf32>
    %160 = vector.extract_strided_slice %159 {offsets = [0, 0], sizes = [8, 32], strides = [1, 1]} : vector<8x128xf32> to vector<8x32xf32>
    %161 = arith.negf %160 : vector<8x32xf32>
    %162 = math.exp %161 : vector<8x32xf32>
    %cst_49 = arith.constant 1.000000e+00 : f32
    %163 = vector.broadcast %cst_49 : f32 to vector<8x32xf32>
    %164 = arith.addf %163, %162 : vector<8x32xf32>
    %165 = arith.divf %163, %164 : vector<8x32xf32>
    %166 = vector.extract_strided_slice %159 {offsets = [0, 32], sizes = [8, 32], strides = [1, 1]} : vector<8x128xf32> to vector<8x32xf32>
    %167 = arith.negf %166 : vector<8x32xf32>
    %168 = math.exp %167 : vector<8x32xf32>
    %cst_50 = arith.constant 1.000000e+00 : f32
    %169 = vector.broadcast %cst_50 : f32 to vector<8x32xf32>
    %170 = arith.addf %169, %168 : vector<8x32xf32>
    %171 = arith.divf %169, %170 : vector<8x32xf32>
    %172 = vector.extract_strided_slice %159 {offsets = [0, 64], sizes = [8, 32], strides = [1, 1]} : vector<8x128xf32> to vector<8x32xf32>
    %173 = math.tanh %172 : vector<8x32xf32>
    %174 = vector.extract_strided_slice %159 {offsets = [0, 96], sizes = [8, 32], strides = [1, 1]} : vector<8x128xf32> to vector<8x32xf32>
    %175 = arith.negf %174 : vector<8x32xf32>
    %176 = math.exp %175 : vector<8x32xf32>
    %cst_51 = arith.constant 1.000000e+00 : f32
    %177 = vector.broadcast %cst_51 : f32 to vector<8x32xf32>
    %178 = arith.addf %177, %176 : vector<8x32xf32>
    %179 = arith.divf %177, %178 : vector<8x32xf32>
    %180 = arith.mulf %171, %145 : vector<8x32xf32>
    %181 = arith.mulf %165, %173 : vector<8x32xf32>
    %182 = arith.addf %180, %181 : vector<8x32xf32>
    %183 = math.tanh %182 : vector<8x32xf32>
    %184 = arith.mulf %179, %183 : vector<8x32xf32>
    %185 = arith.truncf %184 : vector<8x32xf32> to vector<8x32xbf16>
    %186 = arith.index_cast %c4_i32 : i32 to index
    %c0_52 = arith.constant 0 : index
    %c0_53 = arith.constant 0 : index
    %187 = vector.load %arg5[%186, %c0_52, %c0_53] : memref<8x8x32xbf16, #tpu.memory_space<vmem>>, vector<1x8x32xbf16>
    %188 = vector.shape_cast %187 : vector<1x8x32xbf16> to vector<8x32xbf16>
    %189 = vector.shape_cast %185 : vector<8x32xbf16> to vector<1x8x32xbf16>
    tpu.vector_store %arg5[%186, %c0_52, %c0_53], %189 {strides = array<i32>} : memref<8x8x32xbf16, #tpu.memory_space<vmem>>, vector<1x8x32xbf16>,
    %c5_i32 = arith.constant 5 : i32
    %190 = arith.index_cast %c5_i32 : i32 to index
    %c0_54 = arith.constant 0 : index
    %c0_55 = arith.constant 0 : index
    %191 = vector.load %arg2[%190, %c0_54, %c0_55] : memref<8x8x128xf32, #tpu.memory_space<vmem>>, vector<1x8x128xf32>
    %192 = vector.shape_cast %191 : vector<1x8x128xf32> to vector<8x128xf32>
    %193 = arith.truncf %184 : vector<8x32xf32> to vector<8x32xbf16>
    %c0_56 = arith.constant 0 : index
    %c0_57 = arith.constant 0 : index
    %194 = vector.load %arg4[%c0_56, %c0_57] : memref<32x128xbf16, #tpu.memory_space<vmem>>, vector<32x128xbf16>
    %cst_58 = arith.constant dense<0.000000e+00> : vector<8x128xf32>
    %195 = tpu.matmul %193, %194, %cst_58 {dimension_numbers = #tpu.dot_dimension_numbers<[1], [0], [0], [1], [0, 0, 1, 1], [], []>} : vector<8x32xbf16>, vector<32x128xbf16>, vector<8x128xf32> -> vector<8x128xf32>
    %196 = arith.addf %192, %195 : vector<8x128xf32>
    %197 = vector.extract_strided_slice %196 {offsets = [0, 0], sizes = [8, 32], strides = [1, 1]} : vector<8x128xf32> to vector<8x32xf32>
    %198 = arith.negf %197 : vector<8x32xf32>
    %199 = math.exp %198 : vector<8x32xf32>
    %cst_59 = arith.constant 1.000000e+00 : f32
    %200 = vector.broadcast %cst_59 : f32 to vector<8x32xf32>
    %201 = arith.addf %200, %199 : vector<8x32xf32>
    %202 = arith.divf %200, %201 : vector<8x32xf32>
    %203 = vector.extract_strided_slice %196 {offsets = [0, 32], sizes = [8, 32], strides = [1, 1]} : vector<8x128xf32> to vector<8x32xf32>
    %204 = arith.negf %203 : vector<8x32xf32>
    %205 = math.exp %204 : vector<8x32xf32>
    %cst_60 = arith.constant 1.000000e+00 : f32
    %206 = vector.broadcast %cst_60 : f32 to vector<8x32xf32>
    %207 = arith.addf %206, %205 : vector<8x32xf32>
    %208 = arith.divf %206, %207 : vector<8x32xf32>
    %209 = vector.extract_strided_slice %196 {offsets = [0, 64], sizes = [8, 32], strides = [1, 1]} : vector<8x128xf32> to vector<8x32xf32>
    %210 = math.tanh %209 : vector<8x32xf32>
    %211 = vector.extract_strided_slice %196 {offsets = [0, 96], sizes = [8, 32], strides = [1, 1]} : vector<8x128xf32> to vector<8x32xf32>
    %212 = arith.negf %211 : vector<8x32xf32>
    %213 = math.exp %212 : vector<8x32xf32>
    %cst_61 = arith.constant 1.000000e+00 : f32
    %214 = vector.broadcast %cst_61 : f32 to vector<8x32xf32>
    %215 = arith.addf %214, %213 : vector<8x32xf32>
    %216 = arith.divf %214, %215 : vector<8x32xf32>
    %217 = arith.mulf %208, %182 : vector<8x32xf32>
    %218 = arith.mulf %202, %210 : vector<8x32xf32>
    %219 = arith.addf %217, %218 : vector<8x32xf32>
    %220 = math.tanh %219 : vector<8x32xf32>
    %221 = arith.mulf %216, %220 : vector<8x32xf32>
    %222 = arith.truncf %221 : vector<8x32xf32> to vector<8x32xbf16>
    %223 = arith.index_cast %c5_i32 : i32 to index
    %c0_62 = arith.constant 0 : index
    %c0_63 = arith.constant 0 : index
    %224 = vector.load %arg5[%223, %c0_62, %c0_63] : memref<8x8x32xbf16, #tpu.memory_space<vmem>>, vector<1x8x32xbf16>
    %225 = vector.shape_cast %224 : vector<1x8x32xbf16> to vector<8x32xbf16>
    %226 = vector.shape_cast %222 : vector<8x32xbf16> to vector<1x8x32xbf16>
    tpu.vector_store %arg5[%223, %c0_62, %c0_63], %226 {strides = array<i32>} : memref<8x8x32xbf16, #tpu.memory_space<vmem>>, vector<1x8x32xbf16>,
    %c6_i32 = arith.constant 6 : i32
    %227 = arith.index_cast %c6_i32 : i32 to index
    %c0_64 = arith.constant 0 : index
    %c0_65 = arith.constant 0 : index
    %228 = vector.load %arg2[%227, %c0_64, %c0_65] : memref<8x8x128xf32, #tpu.memory_space<vmem>>, vector<1x8x128xf32>
    %229 = vector.shape_cast %228 : vector<1x8x128xf32> to vector<8x128xf32>
    %230 = arith.truncf %221 : vector<8x32xf32> to vector<8x32xbf16>
    %c0_66 = arith.constant 0 : index
    %c0_67 = arith.constant 0 : index
    %231 = vector.load %arg4[%c0_66, %c0_67] : memref<32x128xbf16, #tpu.memory_space<vmem>>, vector<32x128xbf16>
    %cst_68 = arith.constant dense<0.000000e+00> : vector<8x128xf32>
    %232 = tpu.matmul %230, %231, %cst_68 {dimension_numbers = #tpu.dot_dimension_numbers<[1], [0], [0], [1], [0, 0, 1, 1], [], []>} : vector<8x32xbf16>, vector<32x128xbf16>, vector<8x128xf32> -> vector<8x128xf32>
    %233 = arith.addf %229, %232 : vector<8x128xf32>
    %234 = vector.extract_strided_slice %233 {offsets = [0, 0], sizes = [8, 32], strides = [1, 1]} : vector<8x128xf32> to vector<8x32xf32>
    %235 = arith.negf %234 : vector<8x32xf32>
    %236 = math.exp %235 : vector<8x32xf32>
    %cst_69 = arith.constant 1.000000e+00 : f32
    %237 = vector.broadcast %cst_69 : f32 to vector<8x32xf32>
    %238 = arith.addf %237, %236 : vector<8x32xf32>
    %239 = arith.divf %237, %238 : vector<8x32xf32>
    %240 = vector.extract_strided_slice %233 {offsets = [0, 32], sizes = [8, 32], strides = [1, 1]} : vector<8x128xf32> to vector<8x32xf32>
    %241 = arith.negf %240 : vector<8x32xf32>
    %242 = math.exp %241 : vector<8x32xf32>
    %cst_70 = arith.constant 1.000000e+00 : f32
    %243 = vector.broadcast %cst_70 : f32 to vector<8x32xf32>
    %244 = arith.addf %243, %242 : vector<8x32xf32>
    %245 = arith.divf %243, %244 : vector<8x32xf32>
    %246 = vector.extract_strided_slice %233 {offsets = [0, 64], sizes = [8, 32], strides = [1, 1]} : vector<8x128xf32> to vector<8x32xf32>
    %247 = math.tanh %246 : vector<8x32xf32>
    %248 = vector.extract_strided_slice %233 {offsets = [0, 96], sizes = [8, 32], strides = [1, 1]} : vector<8x128xf32> to vector<8x32xf32>
    %249 = arith.negf %248 : vector<8x32xf32>
    %250 = math.exp %249 : vector<8x32xf32>
    %cst_71 = arith.constant 1.000000e+00 : f32
    %251 = vector.broadcast %cst_71 : f32 to vector<8x32xf32>
    %252 = arith.addf %251, %250 : vector<8x32xf32>
    %253 = arith.divf %251, %252 : vector<8x32xf32>
    %254 = arith.mulf %245, %219 : vector<8x32xf32>
    %255 = arith.mulf %239, %247 : vector<8x32xf32>
    %256 = arith.addf %254, %255 : vector<8x32xf32>
    %257 = math.tanh %256 : vector<8x32xf32>
    %258 = arith.mulf %253, %257 : vector<8x32xf32>
    %259 = arith.truncf %258 : vector<8x32xf32> to vector<8x32xbf16>
    %260 = arith.index_cast %c6_i32 : i32 to index
    %c0_72 = arith.constant 0 : index
    %c0_73 = arith.constant 0 : index
    %261 = vector.load %arg5[%260, %c0_72, %c0_73] : memref<8x8x32xbf16, #tpu.memory_space<vmem>>, vector<1x8x32xbf16>
    %262 = vector.shape_cast %261 : vector<1x8x32xbf16> to vector<8x32xbf16>
    %263 = vector.shape_cast %259 : vector<8x32xbf16> to vector<1x8x32xbf16>
    tpu.vector_store %arg5[%260, %c0_72, %c0_73], %263 {strides = array<i32>} : memref<8x8x32xbf16, #tpu.memory_space<vmem>>, vector<1x8x32xbf16>,
    %c7_i32 = arith.constant 7 : i32
    %264 = arith.index_cast %c7_i32 : i32 to index
    %c0_74 = arith.constant 0 : index
    %c0_75 = arith.constant 0 : index
    %265 = vector.load %arg2[%264, %c0_74, %c0_75] : memref<8x8x128xf32, #tpu.memory_space<vmem>>, vector<1x8x128xf32>
    %266 = vector.shape_cast %265 : vector<1x8x128xf32> to vector<8x128xf32>
    %267 = arith.truncf %258 : vector<8x32xf32> to vector<8x32xbf16>
    %c0_76 = arith.constant 0 : index
    %c0_77 = arith.constant 0 : index
    %268 = vector.load %arg4[%c0_76, %c0_77] : memref<32x128xbf16, #tpu.memory_space<vmem>>, vector<32x128xbf16>
    %cst_78 = arith.constant dense<0.000000e+00> : vector<8x128xf32>
    %269 = tpu.matmul %267, %268, %cst_78 {dimension_numbers = #tpu.dot_dimension_numbers<[1], [0], [0], [1], [0, 0, 1, 1], [], []>} : vector<8x32xbf16>, vector<32x128xbf16>, vector<8x128xf32> -> vector<8x128xf32>
    %270 = arith.addf %266, %269 : vector<8x128xf32>
    %271 = vector.extract_strided_slice %270 {offsets = [0, 0], sizes = [8, 32], strides = [1, 1]} : vector<8x128xf32> to vector<8x32xf32>
    %272 = arith.negf %271 : vector<8x32xf32>
    %273 = math.exp %272 : vector<8x32xf32>
    %cst_79 = arith.constant 1.000000e+00 : f32
    %274 = vector.broadcast %cst_79 : f32 to vector<8x32xf32>
    %275 = arith.addf %274, %273 : vector<8x32xf32>
    %276 = arith.divf %274, %275 : vector<8x32xf32>
    %277 = vector.extract_strided_slice %270 {offsets = [0, 32], sizes = [8, 32], strides = [1, 1]} : vector<8x128xf32> to vector<8x32xf32>
    %278 = arith.negf %277 : vector<8x32xf32>
    %279 = math.exp %278 : vector<8x32xf32>
    %cst_80 = arith.constant 1.000000e+00 : f32
    %280 = vector.broadcast %cst_80 : f32 to vector<8x32xf32>
    %281 = arith.addf %280, %279 : vector<8x32xf32>
    %282 = arith.divf %280, %281 : vector<8x32xf32>
    %283 = vector.extract_strided_slice %270 {offsets = [0, 64], sizes = [8, 32], strides = [1, 1]} : vector<8x128xf32> to vector<8x32xf32>
    %284 = math.tanh %283 : vector<8x32xf32>
    %285 = vector.extract_strided_slice %270 {offsets = [0, 96], sizes = [8, 32], strides = [1, 1]} : vector<8x128xf32> to vector<8x32xf32>
    %286 = arith.negf %285 : vector<8x32xf32>
    %287 = math.exp %286 : vector<8x32xf32>
    %cst_81 = arith.constant 1.000000e+00 : f32
    %288 = vector.broadcast %cst_81 : f32 to vector<8x32xf32>
    %289 = arith.addf %288, %287 : vector<8x32xf32>
    %290 = arith.divf %288, %289 : vector<8x32xf32>
    %291 = arith.mulf %282, %256 : vector<8x32xf32>
    %292 = arith.mulf %276, %284 : vector<8x32xf32>
    %293 = arith.addf %291, %292 : vector<8x32xf32>
    %294 = math.tanh %293 : vector<8x32xf32>
    %295 = arith.mulf %290, %294 : vector<8x32xf32>
    %296 = arith.truncf %295 : vector<8x32xf32> to vector<8x32xbf16>
    %297 = arith.index_cast %c7_i32 : i32 to index
    %c0_82 = arith.constant 0 : index
    %c0_83 = arith.constant 0 : index
    %298 = vector.load %arg5[%297, %c0_82, %c0_83] : memref<8x8x32xbf16, #tpu.memory_space<vmem>>, vector<1x8x32xbf16>
    %299 = vector.shape_cast %298 : vector<1x8x32xbf16> to vector<8x32xbf16>
    %300 = vector.shape_cast %296 : vector<8x32xbf16> to vector<1x8x32xbf16>
    tpu.vector_store %arg5[%297, %c0_82, %c0_83], %300 {strides = array<i32>} : memref<8x8x32xbf16, #tpu.memory_space<vmem>>, vector<1x8x32xbf16>,
    %c8_i32 = arith.constant 8 : i32
    %c0_84 = arith.constant 0 : index
    %c0_85 = arith.constant 0 : index
    %301 = vector.load %arg6[%c0_84, %c0_85] : memref<8x32xf32, #tpu.memory_space<vmem>>, vector<8x32xf32>
    tpu.vector_store %arg6[%c0_84, %c0_85], %295 {strides = array<i32>} : memref<8x32xf32, #tpu.memory_space<vmem>>, vector<8x32xf32>,
    %c0_86 = arith.constant 0 : index
    %c0_87 = arith.constant 0 : index
    %302 = vector.load %arg7[%c0_86, %c0_87] : memref<8x32xf32, #tpu.memory_space<vmem>>, vector<8x32xf32>
    tpu.vector_store %arg7[%c0_86, %c0_87], %293 {strides = array<i32>} : memref<8x32xf32, #tpu.memory_space<vmem>>, vector<8x32xf32>,
    return
  }
  func.func @transform_0(%arg0: i32, %arg1: i32) -> (i32, i32, i32) {
    %c0_i32 = arith.constant 0 : i32
    %c0_i32_0 = arith.constant 0 : i32
    return %arg1, %arg0, %c0_i32 : i32, i32, i32
  }
  func.func @transform_1(%arg0: i32, %arg1: i32) -> (i32, i32) {
    %c0_i32 = arith.constant 0 : i32
    %c0_i32_0 = arith.constant 0 : i32
    return %arg0, %c0_i32 : i32, i32
  }
  func.func @transform_2(%arg0: i32, %arg1: i32) -> (i32, i32) {
    %c0_i32 = arith.constant 0 : i32
    %c0_i32_0 = arith.constant 0 : i32
    %c0_i32_1 = arith.constant 0 : i32
    return %c0_i32, %c0_i32_0 : i32, i32
  }
  func.func @transform_3(%arg0: i32, %arg1: i32) -> (i32, i32, i32) {
    %c0_i32 = arith.constant 0 : i32
    %c0_i32_0 = arith.constant 0 : i32
    return %arg1, %arg0, %c0_i32 : i32, i32, i32
  }
}

module attributes {stable_mosaic.version = 11 : i64} {
  func.func @lstm_kernel(%arg0: i32, %arg1: i32, %arg2: memref<8x8x128xf32, #tpu.memory_space<vmem>>, %arg3: memref<8x32xf32, #tpu.memory_space<vmem>>, %arg4: memref<32x128xbf16, #tpu.memory_space<vmem>>, %arg5: memref<8x8x32xbf16, #tpu.memory_space<vmem>>, %arg6: memref<8x32xf32, #tpu.memory_space<vmem>>, %arg7: memref<8x32xf32, #tpu.memory_space<vmem>>) attributes {dimension_semantics = [#tpu.dimension_semantics<parallel>, #tpu.dimension_semantics<arbitrary>], iteration_bounds = array<i64: 1, 1>, scalar_prefetch = 0 : i64, scratch_operands = 2 : i64, tpu.core_type = #tpu.core_type<tc>, window_params = [{transform_indices = @transform_0, window_bounds = array<i64: 8, 8, 128>}, {transform_indices = @transform_1, window_bounds = array<i64: 8, 32>}, {pipeline_mode = #tpu.pipeline_mode<synchronous>, transform_indices = @transform_2, window_bounds = array<i64: 32, 128>}, {transform_indices = @transform_3, window_bounds = array<i64: 8, 8, 32>}]} {
    %c0_i32 = arith.constant 0 : i32
    %0 = arith.cmpi eq, %arg1, %c0_i32 : i32
    %1 = arith.extui %0 : i1 to i32
    %c0_i32_0 = arith.constant 0 : i32
    %2 = arith.cmpi ne, %1, %c0_i32_0 : i32
    scf.if %2 {
      %c0_88 = arith.constant 0 : index
      %c0_89 = arith.constant 0 : index
      %303 = vector.load %arg3[%c0_88, %c0_89] : memref<8x32xf32, #tpu.memory_space<vmem>>, vector<8x32xf32>
      %c0_90 = arith.constant 0 : index
      %c0_91 = arith.constant 0 : index
      %304 = vector.load %arg6[%c0_90, %c0_91] : memref<8x32xf32, #tpu.memory_space<vmem>>, vector<8x32xf32>
      tpu.vector_store %arg6[%c0_90, %c0_91], %303 {strides = array<i32>} : memref<8x32xf32, #tpu.memory_space<vmem>>, vector<8x32xf32>,
      %cst_92 = arith.constant 0.000000e+00 : f32
      %305 = vector.broadcast %cst_92 : f32 to vector<8x32xf32>
      %c0_93 = arith.constant 0 : index
      %c0_94 = arith.constant 0 : index
      %306 = vector.load %arg7[%c0_93, %c0_94] : memref<8x32xf32, #tpu.memory_space<vmem>>, vector<8x32xf32>
      tpu.vector_store %arg7[%c0_93, %c0_94], %305 {strides = array<i32>} : memref<8x32xf32, #tpu.memory_space<vmem>>, vector<8x32xf32>,
    } else {
    }
    %c0 = arith.constant 0 : index
    %c0_1 = arith.constant 0 : index
    %3 = vector.load %arg6[%c0, %c0_1] : memref<8x32xf32, #tpu.memory_space<vmem>>, vector<8x32xf32>
    %c0_2 = arith.constant 0 : index
    %c0_3 = arith.constant 0 : index
    %4 = vector.load %arg7[%c0_2, %c0_3] : memref<8x32xf32, #tpu.memory_space<vmem>>, vector<8x32xf32>
    %c0_i32_4 = arith.constant 0 : i32
    %5 = arith.index_cast %c0_i32_4 : i32 to index
    %c0_5 = arith.constant 0 : index
    %c0_6 = arith.constant 0 : index
    %6 = vector.load %arg2[%5, %c0_5, %c0_6] : memref<8x8x128xf32, #tpu.memory_space<vmem>>, vector<1x8x128xf32>
    %7 = vector.shape_cast %6 : vector<1x8x128xf32> to vector<8x128xf32>
    %8 = arith.truncf %3 : vector<8x32xf32> to vector<8x32xbf16>
    %c0_7 = arith.constant 0 : index
    %c0_8 = arith.constant 0 : index
    %9 = vector.load %arg4[%c0_7, %c0_8] : memref<32x128xbf16, #tpu.memory_space<vmem>>, vector<32x128xbf16>
    %cst = arith.constant dense<0.000000e+00> : vector<8x128xf32>
    %10 = tpu.matmul %8, %9, %cst {dimension_numbers = #tpu.dot_dimension_numbers<[1], [0], [0], [1], [0, 0, 1, 1], [], []>} : vector<8x32xbf16>, vector<32x128xbf16>, vector<8x128xf32> -> vector<8x128xf32>
    %11 = arith.addf %7, %10 : vector<8x128xf32>
    %12 = vector.extract_strided_slice %11 {offsets = [0, 0], sizes = [8, 32], strides = [1, 1]} : vector<8x128xf32> to vector<8x32xf32>
    %13 = arith.negf %12 : vector<8x32xf32>
    %14 = math.exp %13 : vector<8x32xf32>
    %cst_9 = arith.constant 1.000000e+00 : f32
    %15 = vector.broadcast %cst_9 : f32 to vector<8x32xf32>
    %16 = arith.addf %15, %14 : vector<8x32xf32>
    %17 = arith.divf %15, %16 : vector<8x32xf32>
    %18 = vector.extract_strided_slice %11 {offsets = [0, 32], sizes = [8, 32], strides = [1, 1]} : vector<8x128xf32> to vector<8x32xf32>
    %19 = arith.negf %18 : vector<8x32xf32>
    %20 = math.exp %19 : vector<8x32xf32>
    %cst_10 = arith.constant 1.000000e+00 : f32
    %21 = vector.broadcast %cst_10 : f32 to vector<8x32xf32>
    %22 = arith.addf %21, %20 : vector<8x32xf32>
    %23 = arith.divf %21, %22 : vector<8x32xf32>
    %24 = vector.extract_strided_slice %11 {offsets = [0, 64], sizes = [8, 32], strides = [1, 1]} : vector<8x128xf32> to vector<8x32xf32>
    %25 = math.tanh %24 : vector<8x32xf32>
    %26 = vector.extract_strided_slice %11 {offsets = [0, 96], sizes = [8, 32], strides = [1, 1]} : vector<8x128xf32> to vector<8x32xf32>
    %27 = arith.negf %26 : vector<8x32xf32>
    %28 = math.exp %27 : vector<8x32xf32>
    %cst_11 = arith.constant 1.000000e+00 : f32
    %29 = vector.broadcast %cst_11 : f32 to vector<8x32xf32>
    %30 = arith.addf %29, %28 : vector<8x32xf32>
    %31 = arith.divf %29, %30 : vector<8x32xf32>
    %32 = arith.mulf %23, %4 : vector<8x32xf32>
    %33 = arith.mulf %17, %25 : vector<8x32xf32>
    %34 = arith.addf %32, %33 : vector<8x32xf32>
    %35 = math.tanh %34 : vector<8x32xf32>
    %36 = arith.mulf %31, %35 : vector<8x32xf32>
    %37 = arith.truncf %36 : vector<8x32xf32> to vector<8x32xbf16>
    %38 = arith.index_cast %c0_i32_4 : i32 to index
    %c0_12 = arith.constant 0 : index
    %c0_13 = arith.constant 0 : index
    %39 = vector.load %arg5[%38, %c0_12, %c0_13] : memref<8x8x32xbf16, #tpu.memory_space<vmem>>, vector<1x8x32xbf16>
    %40 = vector.shape_cast %39 : vector<1x8x32xbf16> to vector<8x32xbf16>
    %41 = vector.shape_cast %37 : vector<8x32xbf16> to vector<1x8x32xbf16>
    tpu.vector_store %arg5[%38, %c0_12, %c0_13], %41 {strides = array<i32>} : memref<8x8x32xbf16, #tpu.memory_space<vmem>>, vector<1x8x32xbf16>,
    %c1_i32 = arith.constant 1 : i32
    %42 = arith.index_cast %c1_i32 : i32 to index
    %c0_14 = arith.constant 0 : index
    %c0_15 = arith.constant 0 : index
    %43 = vector.load %arg2[%42, %c0_14, %c0_15] : memref<8x8x128xf32, #tpu.memory_space<vmem>>, vector<1x8x128xf32>
    %44 = vector.shape_cast %43 : vector<1x8x128xf32> to vector<8x128xf32>
    %45 = arith.truncf %36 : vector<8x32xf32> to vector<8x32xbf16>
    %c0_16 = arith.constant 0 : index
    %c0_17 = arith.constant 0 : index
    %46 = vector.load %arg4[%c0_16, %c0_17] : memref<32x128xbf16, #tpu.memory_space<vmem>>, vector<32x128xbf16>
    %cst_18 = arith.constant dense<0.000000e+00> : vector<8x128xf32>
    %47 = tpu.matmul %45, %46, %cst_18 {dimension_numbers = #tpu.dot_dimension_numbers<[1], [0], [0], [1], [0, 0, 1, 1], [], []>} : vector<8x32xbf16>, vector<32x128xbf16>, vector<8x128xf32> -> vector<8x128xf32>
    %48 = arith.addf %44, %47 : vector<8x128xf32>
    %49 = vector.extract_strided_slice %48 {offsets = [0, 0], sizes = [8, 32], strides = [1, 1]} : vector<8x128xf32> to vector<8x32xf32>
    %50 = arith.negf %49 : vector<8x32xf32>
    %51 = math.exp %50 : vector<8x32xf32>
    %cst_19 = arith.constant 1.000000e+00 : f32
    %52 = vector.broadcast %cst_19 : f32 to vector<8x32xf32>
    %53 = arith.addf %52, %51 : vector<8x32xf32>
    %54 = arith.divf %52, %53 : vector<8x32xf32>
    %55 = vector.extract_strided_slice %48 {offsets = [0, 32], sizes = [8, 32], strides = [1, 1]} : vector<8x128xf32> to vector<8x32xf32>
    %56 = arith.negf %55 : vector<8x32xf32>
    %57 = math.exp %56 : vector<8x32xf32>
    %cst_20 = arith.constant 1.000000e+00 : f32
    %58 = vector.broadcast %cst_20 : f32 to vector<8x32xf32>
    %59 = arith.addf %58, %57 : vector<8x32xf32>
    %60 = arith.divf %58, %59 : vector<8x32xf32>
    %61 = vector.extract_strided_slice %48 {offsets = [0, 64], sizes = [8, 32], strides = [1, 1]} : vector<8x128xf32> to vector<8x32xf32>
    %62 = math.tanh %61 : vector<8x32xf32>
    %63 = vector.extract_strided_slice %48 {offsets = [0, 96], sizes = [8, 32], strides = [1, 1]} : vector<8x128xf32> to vector<8x32xf32>
    %64 = arith.negf %63 : vector<8x32xf32>
    %65 = math.exp %64 : vector<8x32xf32>
    %cst_21 = arith.constant 1.000000e+00 : f32
    %66 = vector.broadcast %cst_21 : f32 to vector<8x32xf32>
    %67 = arith.addf %66, %65 : vector<8x32xf32>
    %68 = arith.divf %66, %67 : vector<8x32xf32>
    %69 = arith.mulf %60, %34 : vector<8x32xf32>
    %70 = arith.mulf %54, %62 : vector<8x32xf32>
    %71 = arith.addf %69, %70 : vector<8x32xf32>
    %72 = math.tanh %71 : vector<8x32xf32>
    %73 = arith.mulf %68, %72 : vector<8x32xf32>
    %74 = arith.truncf %73 : vector<8x32xf32> to vector<8x32xbf16>
    %75 = arith.index_cast %c1_i32 : i32 to index
    %c0_22 = arith.constant 0 : index
    %c0_23 = arith.constant 0 : index
    %76 = vector.load %arg5[%75, %c0_22, %c0_23] : memref<8x8x32xbf16, #tpu.memory_space<vmem>>, vector<1x8x32xbf16>
    %77 = vector.shape_cast %76 : vector<1x8x32xbf16> to vector<8x32xbf16>
    %78 = vector.shape_cast %74 : vector<8x32xbf16> to vector<1x8x32xbf16>
    tpu.vector_store %arg5[%75, %c0_22, %c0_23], %78 {strides = array<i32>} : memref<8x8x32xbf16, #tpu.memory_space<vmem>>, vector<1x8x32xbf16>,
    %c2_i32 = arith.constant 2 : i32
    %79 = arith.index_cast %c2_i32 : i32 to index
    %c0_24 = arith.constant 0 : index
    %c0_25 = arith.constant 0 : index
    %80 = vector.load %arg2[%79, %c0_24, %c0_25] : memref<8x8x128xf32, #tpu.memory_space<vmem>>, vector<1x8x128xf32>
    %81 = vector.shape_cast %80 : vector<1x8x128xf32> to vector<8x128xf32>
    %82 = arith.truncf %73 : vector<8x32xf32> to vector<8x32xbf16>
    %c0_26 = arith.constant 0 : index
    %c0_27 = arith.constant 0 : index
    %83 = vector.load %arg4[%c0_26, %c0_27] : memref<32x128xbf16, #tpu.memory_space<vmem>>, vector<32x128xbf16>
    %cst_28 = arith.constant dense<0.000000e+00> : vector<8x128xf32>
    %84 = tpu.matmul %82, %83, %cst_28 {dimension_numbers = #tpu.dot_dimension_numbers<[1], [0], [0], [1], [0, 0, 1, 1], [], []>} : vector<8x32xbf16>, vector<32x128xbf16>, vector<8x128xf32> -> vector<8x128xf32>
    %85 = arith.addf %81, %84 : vector<8x128xf32>
    %86 = vector.extract_strided_slice %85 {offsets = [0, 0], sizes = [8, 32], strides = [1, 1]} : vector<8x128xf32> to vector<8x32xf32>
    %87 = arith.negf %86 : vector<8x32xf32>
    %88 = math.exp %87 : vector<8x32xf32>
    %cst_29 = arith.constant 1.000000e+00 : f32
    %89 = vector.broadcast %cst_29 : f32 to vector<8x32xf32>
    %90 = arith.addf %89, %88 : vector<8x32xf32>
    %91 = arith.divf %89, %90 : vector<8x32xf32>
    %92 = vector.extract_strided_slice %85 {offsets = [0, 32], sizes = [8, 32], strides = [1, 1]} : vector<8x128xf32> to vector<8x32xf32>
    %93 = arith.negf %92 : vector<8x32xf32>
    %94 = math.exp %93 : vector<8x32xf32>
    %cst_30 = arith.constant 1.000000e+00 : f32
    %95 = vector.broadcast %cst_30 : f32 to vector<8x32xf32>
    %96 = arith.addf %95, %94 : vector<8x32xf32>
    %97 = arith.divf %95, %96 : vector<8x32xf32>
    %98 = vector.extract_strided_slice %85 {offsets = [0, 64], sizes = [8, 32], strides = [1, 1]} : vector<8x128xf32> to vector<8x32xf32>
    %99 = math.tanh %98 : vector<8x32xf32>
    %100 = vector.extract_strided_slice %85 {offsets = [0, 96], sizes = [8, 32], strides = [1, 1]} : vector<8x128xf32> to vector<8x32xf32>
    %101 = arith.negf %100 : vector<8x32xf32>
    %102 = math.exp %101 : vector<8x32xf32>
    %cst_31 = arith.constant 1.000000e+00 : f32
    %103 = vector.broadcast %cst_31 : f32 to vector<8x32xf32>
    %104 = arith.addf %103, %102 : vector<8x32xf32>
    %105 = arith.divf %103, %104 : vector<8x32xf32>
    %106 = arith.mulf %97, %71 : vector<8x32xf32>
    %107 = arith.mulf %91, %99 : vector<8x32xf32>
    %108 = arith.addf %106, %107 : vector<8x32xf32>
    %109 = math.tanh %108 : vector<8x32xf32>
    %110 = arith.mulf %105, %109 : vector<8x32xf32>
    %111 = arith.truncf %110 : vector<8x32xf32> to vector<8x32xbf16>
    %112 = arith.index_cast %c2_i32 : i32 to index
    %c0_32 = arith.constant 0 : index
    %c0_33 = arith.constant 0 : index
    %113 = vector.load %arg5[%112, %c0_32, %c0_33] : memref<8x8x32xbf16, #tpu.memory_space<vmem>>, vector<1x8x32xbf16>
    %114 = vector.shape_cast %113 : vector<1x8x32xbf16> to vector<8x32xbf16>
    %115 = vector.shape_cast %111 : vector<8x32xbf16> to vector<1x8x32xbf16>
    tpu.vector_store %arg5[%112, %c0_32, %c0_33], %115 {strides = array<i32>} : memref<8x8x32xbf16, #tpu.memory_space<vmem>>, vector<1x8x32xbf16>,
    %c3_i32 = arith.constant 3 : i32
    %116 = arith.index_cast %c3_i32 : i32 to index
    %c0_34 = arith.constant 0 : index
    %c0_35 = arith.constant 0 : index
    %117 = vector.load %arg2[%116, %c0_34, %c0_35] : memref<8x8x128xf32, #tpu.memory_space<vmem>>, vector<1x8x128xf32>
    %118 = vector.shape_cast %117 : vector<1x8x128xf32> to vector<8x128xf32>
    %119 = arith.truncf %110 : vector<8x32xf32> to vector<8x32xbf16>
    %c0_36 = arith.constant 0 : index
    %c0_37 = arith.constant 0 : index
    %120 = vector.load %arg4[%c0_36, %c0_37] : memref<32x128xbf16, #tpu.memory_space<vmem>>, vector<32x128xbf16>
    %cst_38 = arith.constant dense<0.000000e+00> : vector<8x128xf32>
    %121 = tpu.matmul %119, %120, %cst_38 {dimension_numbers = #tpu.dot_dimension_numbers<[1], [0], [0], [1], [0, 0, 1, 1], [], []>} : vector<8x32xbf16>, vector<32x128xbf16>, vector<8x128xf32> -> vector<8x128xf32>
    %122 = arith.addf %118, %121 : vector<8x128xf32>
    %123 = vector.extract_strided_slice %122 {offsets = [0, 0], sizes = [8, 32], strides = [1, 1]} : vector<8x128xf32> to vector<8x32xf32>
    %124 = arith.negf %123 : vector<8x32xf32>
    %125 = math.exp %124 : vector<8x32xf32>
    %cst_39 = arith.constant 1.000000e+00 : f32
    %126 = vector.broadcast %cst_39 : f32 to vector<8x32xf32>
    %127 = arith.addf %126, %125 : vector<8x32xf32>
    %128 = arith.divf %126, %127 : vector<8x32xf32>
    %129 = vector.extract_strided_slice %122 {offsets = [0, 32], sizes = [8, 32], strides = [1, 1]} : vector<8x128xf32> to vector<8x32xf32>
    %130 = arith.negf %129 : vector<8x32xf32>
    %131 = math.exp %130 : vector<8x32xf32>
    %cst_40 = arith.constant 1.000000e+00 : f32
    %132 = vector.broadcast %cst_40 : f32 to vector<8x32xf32>
    %133 = arith.addf %132, %131 : vector<8x32xf32>
    %134 = arith.divf %132, %133 : vector<8x32xf32>
    %135 = vector.extract_strided_slice %122 {offsets = [0, 64], sizes = [8, 32], strides = [1, 1]} : vector<8x128xf32> to vector<8x32xf32>
    %136 = math.tanh %135 : vector<8x32xf32>
    %137 = vector.extract_strided_slice %122 {offsets = [0, 96], sizes = [8, 32], strides = [1, 1]} : vector<8x128xf32> to vector<8x32xf32>
    %138 = arith.negf %137 : vector<8x32xf32>
    %139 = math.exp %138 : vector<8x32xf32>
    %cst_41 = arith.constant 1.000000e+00 : f32
    %140 = vector.broadcast %cst_41 : f32 to vector<8x32xf32>
    %141 = arith.addf %140, %139 : vector<8x32xf32>
    %142 = arith.divf %140, %141 : vector<8x32xf32>
    %143 = arith.mulf %134, %108 : vector<8x32xf32>
    %144 = arith.mulf %128, %136 : vector<8x32xf32>
    %145 = arith.addf %143, %144 : vector<8x32xf32>
    %146 = math.tanh %145 : vector<8x32xf32>
    %147 = arith.mulf %142, %146 : vector<8x32xf32>
    %148 = arith.truncf %147 : vector<8x32xf32> to vector<8x32xbf16>
    %149 = arith.index_cast %c3_i32 : i32 to index
    %c0_42 = arith.constant 0 : index
    %c0_43 = arith.constant 0 : index
    %150 = vector.load %arg5[%149, %c0_42, %c0_43] : memref<8x8x32xbf16, #tpu.memory_space<vmem>>, vector<1x8x32xbf16>
    %151 = vector.shape_cast %150 : vector<1x8x32xbf16> to vector<8x32xbf16>
    %152 = vector.shape_cast %148 : vector<8x32xbf16> to vector<1x8x32xbf16>
    tpu.vector_store %arg5[%149, %c0_42, %c0_43], %152 {strides = array<i32>} : memref<8x8x32xbf16, #tpu.memory_space<vmem>>, vector<1x8x32xbf16>,
    %c4_i32 = arith.constant 4 : i32
    %153 = arith.index_cast %c4_i32 : i32 to index
    %c0_44 = arith.constant 0 : index
    %c0_45 = arith.constant 0 : index
    %154 = vector.load %arg2[%153, %c0_44, %c0_45] : memref<8x8x128xf32, #tpu.memory_space<vmem>>, vector<1x8x128xf32>
    %155 = vector.shape_cast %154 : vector<1x8x128xf32> to vector<8x128xf32>
    %156 = arith.truncf %147 : vector<8x32xf32> to vector<8x32xbf16>
    %c0_46 = arith.constant 0 : index
    %c0_47 = arith.constant 0 : index
    %157 = vector.load %arg4[%c0_46, %c0_47] : memref<32x128xbf16, #tpu.memory_space<vmem>>, vector<32x128xbf16>
    %cst_48 = arith.constant dense<0.000000e+00> : vector<8x128xf32>
    %158 = tpu.matmul %156, %157, %cst_48 {dimension_numbers = #tpu.dot_dimension_numbers<[1], [0], [0], [1], [0, 0, 1, 1], [], []>} : vector<8x32xbf16>, vector<32x128xbf16>, vector<8x128xf32> -> vector<8x128xf32>
    %159 = arith.addf %155, %158 : vector<8x128xf32>
    %160 = vector.extract_strided_slice %159 {offsets = [0, 0], sizes = [8, 32], strides = [1, 1]} : vector<8x128xf32> to vector<8x32xf32>
    %161 = arith.negf %160 : vector<8x32xf32>
    %162 = math.exp %161 : vector<8x32xf32>
    %cst_49 = arith.constant 1.000000e+00 : f32
    %163 = vector.broadcast %cst_49 : f32 to vector<8x32xf32>
    %164 = arith.addf %163, %162 : vector<8x32xf32>
    %165 = arith.divf %163, %164 : vector<8x32xf32>
    %166 = vector.extract_strided_slice %159 {offsets = [0, 32], sizes = [8, 32], strides = [1, 1]} : vector<8x128xf32> to vector<8x32xf32>
    %167 = arith.negf %166 : vector<8x32xf32>
    %168 = math.exp %167 : vector<8x32xf32>
    %cst_50 = arith.constant 1.000000e+00 : f32
    %169 = vector.broadcast %cst_50 : f32 to vector<8x32xf32>
    %170 = arith.addf %169, %168 : vector<8x32xf32>
    %171 = arith.divf %169, %170 : vector<8x32xf32>
    %172 = vector.extract_strided_slice %159 {offsets = [0, 64], sizes = [8, 32], strides = [1, 1]} : vector<8x128xf32> to vector<8x32xf32>
    %173 = math.tanh %172 : vector<8x32xf32>
    %174 = vector.extract_strided_slice %159 {offsets = [0, 96], sizes = [8, 32], strides = [1, 1]} : vector<8x128xf32> to vector<8x32xf32>
    %175 = arith.negf %174 : vector<8x32xf32>
    %176 = math.exp %175 : vector<8x32xf32>
    %cst_51 = arith.constant 1.000000e+00 : f32
    %177 = vector.broadcast %cst_51 : f32 to vector<8x32xf32>
    %178 = arith.addf %177, %176 : vector<8x32xf32>
    %179 = arith.divf %177, %178 : vector<8x32xf32>
    %180 = arith.mulf %171, %145 : vector<8x32xf32>
    %181 = arith.mulf %165, %173 : vector<8x32xf32>
    %182 = arith.addf %180, %181 : vector<8x32xf32>
    %183 = math.tanh %182 : vector<8x32xf32>
    %184 = arith.mulf %179, %183 : vector<8x32xf32>
    %185 = arith.truncf %184 : vector<8x32xf32> to vector<8x32xbf16>
    %186 = arith.index_cast %c4_i32 : i32 to index
    %c0_52 = arith.constant 0 : index
    %c0_53 = arith.constant 0 : index
    %187 = vector.load %arg5[%186, %c0_52, %c0_53] : memref<8x8x32xbf16, #tpu.memory_space<vmem>>, vector<1x8x32xbf16>
    %188 = vector.shape_cast %187 : vector<1x8x32xbf16> to vector<8x32xbf16>
    %189 = vector.shape_cast %185 : vector<8x32xbf16> to vector<1x8x32xbf16>
    tpu.vector_store %arg5[%186, %c0_52, %c0_53], %189 {strides = array<i32>} : memref<8x8x32xbf16, #tpu.memory_space<vmem>>, vector<1x8x32xbf16>,
    %c5_i32 = arith.constant 5 : i32
    %190 = arith.index_cast %c5_i32 : i32 to index
    %c0_54 = arith.constant 0 : index
    %c0_55 = arith.constant 0 : index
    %191 = vector.load %arg2[%190, %c0_54, %c0_55] : memref<8x8x128xf32, #tpu.memory_space<vmem>>, vector<1x8x128xf32>
    %192 = vector.shape_cast %191 : vector<1x8x128xf32> to vector<8x128xf32>
    %193 = arith.truncf %184 : vector<8x32xf32> to vector<8x32xbf16>
    %c0_56 = arith.constant 0 : index
    %c0_57 = arith.constant 0 : index
    %194 = vector.load %arg4[%c0_56, %c0_57] : memref<32x128xbf16, #tpu.memory_space<vmem>>, vector<32x128xbf16>
    %cst_58 = arith.constant dense<0.000000e+00> : vector<8x128xf32>
    %195 = tpu.matmul %193, %194, %cst_58 {dimension_numbers = #tpu.dot_dimension_numbers<[1], [0], [0], [1], [0, 0, 1, 1], [], []>} : vector<8x32xbf16>, vector<32x128xbf16>, vector<8x128xf32> -> vector<8x128xf32>
    %196 = arith.addf %192, %195 : vector<8x128xf32>
    %197 = vector.extract_strided_slice %196 {offsets = [0, 0], sizes = [8, 32], strides = [1, 1]} : vector<8x128xf32> to vector<8x32xf32>
    %198 = arith.negf %197 : vector<8x32xf32>
    %199 = math.exp %198 : vector<8x32xf32>
    %cst_59 = arith.constant 1.000000e+00 : f32
    %200 = vector.broadcast %cst_59 : f32 to vector<8x32xf32>
    %201 = arith.addf %200, %199 : vector<8x32xf32>
    %202 = arith.divf %200, %201 : vector<8x32xf32>
    %203 = vector.extract_strided_slice %196 {offsets = [0, 32], sizes = [8, 32], strides = [1, 1]} : vector<8x128xf32> to vector<8x32xf32>
    %204 = arith.negf %203 : vector<8x32xf32>
    %205 = math.exp %204 : vector<8x32xf32>
    %cst_60 = arith.constant 1.000000e+00 : f32
    %206 = vector.broadcast %cst_60 : f32 to vector<8x32xf32>
    %207 = arith.addf %206, %205 : vector<8x32xf32>
    %208 = arith.divf %206, %207 : vector<8x32xf32>
    %209 = vector.extract_strided_slice %196 {offsets = [0, 64], sizes = [8, 32], strides = [1, 1]} : vector<8x128xf32> to vector<8x32xf32>
    %210 = math.tanh %209 : vector<8x32xf32>
    %211 = vector.extract_strided_slice %196 {offsets = [0, 96], sizes = [8, 32], strides = [1, 1]} : vector<8x128xf32> to vector<8x32xf32>
    %212 = arith.negf %211 : vector<8x32xf32>
    %213 = math.exp %212 : vector<8x32xf32>
    %cst_61 = arith.constant 1.000000e+00 : f32
    %214 = vector.broadcast %cst_61 : f32 to vector<8x32xf32>
    %215 = arith.addf %214, %213 : vector<8x32xf32>
    %216 = arith.divf %214, %215 : vector<8x32xf32>
    %217 = arith.mulf %208, %182 : vector<8x32xf32>
    %218 = arith.mulf %202, %210 : vector<8x32xf32>
    %219 = arith.addf %217, %218 : vector<8x32xf32>
    %220 = math.tanh %219 : vector<8x32xf32>
    %221 = arith.mulf %216, %220 : vector<8x32xf32>
    %222 = arith.truncf %221 : vector<8x32xf32> to vector<8x32xbf16>
    %223 = arith.index_cast %c5_i32 : i32 to index
    %c0_62 = arith.constant 0 : index
    %c0_63 = arith.constant 0 : index
    %224 = vector.load %arg5[%223, %c0_62, %c0_63] : memref<8x8x32xbf16, #tpu.memory_space<vmem>>, vector<1x8x32xbf16>
    %225 = vector.shape_cast %224 : vector<1x8x32xbf16> to vector<8x32xbf16>
    %226 = vector.shape_cast %222 : vector<8x32xbf16> to vector<1x8x32xbf16>
    tpu.vector_store %arg5[%223, %c0_62, %c0_63], %226 {strides = array<i32>} : memref<8x8x32xbf16, #tpu.memory_space<vmem>>, vector<1x8x32xbf16>,
    %c6_i32 = arith.constant 6 : i32
    %227 = arith.index_cast %c6_i32 : i32 to index
    %c0_64 = arith.constant 0 : index
    %c0_65 = arith.constant 0 : index
    %228 = vector.load %arg2[%227, %c0_64, %c0_65] : memref<8x8x128xf32, #tpu.memory_space<vmem>>, vector<1x8x128xf32>
    %229 = vector.shape_cast %228 : vector<1x8x128xf32> to vector<8x128xf32>
    %230 = arith.truncf %221 : vector<8x32xf32> to vector<8x32xbf16>
    %c0_66 = arith.constant 0 : index
    %c0_67 = arith.constant 0 : index
    %231 = vector.load %arg4[%c0_66, %c0_67] : memref<32x128xbf16, #tpu.memory_space<vmem>>, vector<32x128xbf16>
    %cst_68 = arith.constant dense<0.000000e+00> : vector<8x128xf32>
    %232 = tpu.matmul %230, %231, %cst_68 {dimension_numbers = #tpu.dot_dimension_numbers<[1], [0], [0], [1], [0, 0, 1, 1], [], []>} : vector<8x32xbf16>, vector<32x128xbf16>, vector<8x128xf32> -> vector<8x128xf32>
    %233 = arith.addf %229, %232 : vector<8x128xf32>
    %234 = vector.extract_strided_slice %233 {offsets = [0, 0], sizes = [8, 32], strides = [1, 1]} : vector<8x128xf32> to vector<8x32xf32>
    %235 = arith.negf %234 : vector<8x32xf32>
    %236 = math.exp %235 : vector<8x32xf32>
    %cst_69 = arith.constant 1.000000e+00 : f32
    %237 = vector.broadcast %cst_69 : f32 to vector<8x32xf32>
    %238 = arith.addf %237, %236 : vector<8x32xf32>
    %239 = arith.divf %237, %238 : vector<8x32xf32>
    %240 = vector.extract_strided_slice %233 {offsets = [0, 32], sizes = [8, 32], strides = [1, 1]} : vector<8x128xf32> to vector<8x32xf32>
    %241 = arith.negf %240 : vector<8x32xf32>
    %242 = math.exp %241 : vector<8x32xf32>
    %cst_70 = arith.constant 1.000000e+00 : f32
    %243 = vector.broadcast %cst_70 : f32 to vector<8x32xf32>
    %244 = arith.addf %243, %242 : vector<8x32xf32>
    %245 = arith.divf %243, %244 : vector<8x32xf32>
    %246 = vector.extract_strided_slice %233 {offsets = [0, 64], sizes = [8, 32], strides = [1, 1]} : vector<8x128xf32> to vector<8x32xf32>
    %247 = math.tanh %246 : vector<8x32xf32>
    %248 = vector.extract_strided_slice %233 {offsets = [0, 96], sizes = [8, 32], strides = [1, 1]} : vector<8x128xf32> to vector<8x32xf32>
    %249 = arith.negf %248 : vector<8x32xf32>
    %250 = math.exp %249 : vector<8x32xf32>
    %cst_71 = arith.constant 1.000000e+00 : f32
    %251 = vector.broadcast %cst_71 : f32 to vector<8x32xf32>
    %252 = arith.addf %251, %250 : vector<8x32xf32>
    %253 = arith.divf %251, %252 : vector<8x32xf32>
    %254 = arith.mulf %245, %219 : vector<8x32xf32>
    %255 = arith.mulf %239, %247 : vector<8x32xf32>
    %256 = arith.addf %254, %255 : vector<8x32xf32>
    %257 = math.tanh %256 : vector<8x32xf32>
    %258 = arith.mulf %253, %257 : vector<8x32xf32>
    %259 = arith.truncf %258 : vector<8x32xf32> to vector<8x32xbf16>
    %260 = arith.index_cast %c6_i32 : i32 to index
    %c0_72 = arith.constant 0 : index
    %c0_73 = arith.constant 0 : index
    %261 = vector.load %arg5[%260, %c0_72, %c0_73] : memref<8x8x32xbf16, #tpu.memory_space<vmem>>, vector<1x8x32xbf16>
    %262 = vector.shape_cast %261 : vector<1x8x32xbf16> to vector<8x32xbf16>
    %263 = vector.shape_cast %259 : vector<8x32xbf16> to vector<1x8x32xbf16>
    tpu.vector_store %arg5[%260, %c0_72, %c0_73], %263 {strides = array<i32>} : memref<8x8x32xbf16, #tpu.memory_space<vmem>>, vector<1x8x32xbf16>,
    %c7_i32 = arith.constant 7 : i32
    %264 = arith.index_cast %c7_i32 : i32 to index
    %c0_74 = arith.constant 0 : index
    %c0_75 = arith.constant 0 : index
    %265 = vector.load %arg2[%264, %c0_74, %c0_75] : memref<8x8x128xf32, #tpu.memory_space<vmem>>, vector<1x8x128xf32>
    %266 = vector.shape_cast %265 : vector<1x8x128xf32> to vector<8x128xf32>
    %267 = arith.truncf %258 : vector<8x32xf32> to vector<8x32xbf16>
    %c0_76 = arith.constant 0 : index
    %c0_77 = arith.constant 0 : index
    %268 = vector.load %arg4[%c0_76, %c0_77] : memref<32x128xbf16, #tpu.memory_space<vmem>>, vector<32x128xbf16>
    %cst_78 = arith.constant dense<0.000000e+00> : vector<8x128xf32>
    %269 = tpu.matmul %267, %268, %cst_78 {dimension_numbers = #tpu.dot_dimension_numbers<[1], [0], [0], [1], [0, 0, 1, 1], [], []>} : vector<8x32xbf16>, vector<32x128xbf16>, vector<8x128xf32> -> vector<8x128xf32>
    %270 = arith.addf %266, %269 : vector<8x128xf32>
    %271 = vector.extract_strided_slice %270 {offsets = [0, 0], sizes = [8, 32], strides = [1, 1]} : vector<8x128xf32> to vector<8x32xf32>
    %272 = arith.negf %271 : vector<8x32xf32>
    %273 = math.exp %272 : vector<8x32xf32>
    %cst_79 = arith.constant 1.000000e+00 : f32
    %274 = vector.broadcast %cst_79 : f32 to vector<8x32xf32>
    %275 = arith.addf %274, %273 : vector<8x32xf32>
    %276 = arith.divf %274, %275 : vector<8x32xf32>
    %277 = vector.extract_strided_slice %270 {offsets = [0, 32], sizes = [8, 32], strides = [1, 1]} : vector<8x128xf32> to vector<8x32xf32>
    %278 = arith.negf %277 : vector<8x32xf32>
    %279 = math.exp %278 : vector<8x32xf32>
    %cst_80 = arith.constant 1.000000e+00 : f32
    %280 = vector.broadcast %cst_80 : f32 to vector<8x32xf32>
    %281 = arith.addf %280, %279 : vector<8x32xf32>
    %282 = arith.divf %280, %281 : vector<8x32xf32>
    %283 = vector.extract_strided_slice %270 {offsets = [0, 64], sizes = [8, 32], strides = [1, 1]} : vector<8x128xf32> to vector<8x32xf32>
    %284 = math.tanh %283 : vector<8x32xf32>
    %285 = vector.extract_strided_slice %270 {offsets = [0, 96], sizes = [8, 32], strides = [1, 1]} : vector<8x128xf32> to vector<8x32xf32>
    %286 = arith.negf %285 : vector<8x32xf32>
    %287 = math.exp %286 : vector<8x32xf32>
    %cst_81 = arith.constant 1.000000e+00 : f32
    %288 = vector.broadcast %cst_81 : f32 to vector<8x32xf32>
    %289 = arith.addf %288, %287 : vector<8x32xf32>
    %290 = arith.divf %288, %289 : vector<8x32xf32>
    %291 = arith.mulf %282, %256 : vector<8x32xf32>
    %292 = arith.mulf %276, %284 : vector<8x32xf32>
    %293 = arith.addf %291, %292 : vector<8x32xf32>
    %294 = math.tanh %293 : vector<8x32xf32>
    %295 = arith.mulf %290, %294 : vector<8x32xf32>
    %296 = arith.truncf %295 : vector<8x32xf32> to vector<8x32xbf16>
    %297 = arith.index_cast %c7_i32 : i32 to index
    %c0_82 = arith.constant 0 : index
    %c0_83 = arith.constant 0 : index
    %298 = vector.load %arg5[%297, %c0_82, %c0_83] : memref<8x8x32xbf16, #tpu.memory_space<vmem>>, vector<1x8x32xbf16>
    %299 = vector.shape_cast %298 : vector<1x8x32xbf16> to vector<8x32xbf16>
    %300 = vector.shape_cast %296 : vector<8x32xbf16> to vector<1x8x32xbf16>
    tpu.vector_store %arg5[%297, %c0_82, %c0_83], %300 {strides = array<i32>} : memref<8x8x32xbf16, #tpu.memory_space<vmem>>, vector<1x8x32xbf16>,
    %c8_i32 = arith.constant 8 : i32
    %c0_84 = arith.constant 0 : index
    %c0_85 = arith.constant 0 : index
    %301 = vector.load %arg6[%c0_84, %c0_85] : memref<8x32xf32, #tpu.memory_space<vmem>>, vector<8x32xf32>
    tpu.vector_store %arg6[%c0_84, %c0_85], %295 {strides = array<i32>} : memref<8x32xf32, #tpu.memory_space<vmem>>, vector<8x32xf32>,
    %c0_86 = arith.constant 0 : index
    %c0_87 = arith.constant 0 : index
    %302 = vector.load %arg7[%c0_86, %c0_87] : memref<8x32xf32, #tpu.memory_space<vmem>>, vector<8x32xf32>
    tpu.vector_store %arg7[%c0_86, %c0_87], %293 {strides = array<i32>} : memref<8x32xf32, #tpu.memory_space<vmem>>, vector<8x32xf32>,
    return
  }
  func.func @transform_0(%arg0: i32, %arg1: i32) -> (i32, i32, i32) {
    %c0_i32 = arith.constant 0 : i32
    %c0_i32_0 = arith.constant 0 : i32
    return %arg1, %arg0, %c0_i32 : i32, i32, i32
  }
  func.func @transform_1(%arg0: i32, %arg1: i32) -> (i32, i32) {
    %c0_i32 = arith.constant 0 : i32
    %c0_i32_0 = arith.constant 0 : i32
    return %arg0, %c0_i32 : i32, i32
  }
  func.func @transform_2(%arg0: i32, %arg1: i32) -> (i32, i32) {
    %c0_i32 = arith.constant 0 : i32
    %c0_i32_0 = arith.constant 0 : i32
    %c0_i32_1 = arith.constant 0 : i32
    return %c0_i32, %c0_i32_0 : i32, i32
  }
  func.func @transform_3(%arg0: i32, %arg1: i32) -> (i32, i32, i32) {
    %c0_i32 = arith.constant 0 : i32
    %c0_i32_0 = arith.constant 0 : i32
    return %arg1, %arg0, %c0_i32 : i32, i32, i32
  }
}

</mosaic_0001>

<bundles_post_ra>
// kernel: tpu_custom_call.1
= control target key start
LH: loop header
LB: loop body
LE: loop exit
PB: predicated region body
PF: predicated region fallthrough
CT: control target
= control target key end

     0   :  { %8 = vsyncpa [#allocation5], 0  ;;  %s1354_s0 = inlined_call_operand.hbm [shape: f32[8,8,128], index: 0, kind: input, shape index: {}]   ;;  %s1355_s1 = inlined_call_operand.hbm [shape: f32[8,32], index: 1, kind: input, shape index: {}]   ;;  %s1356_s2 = inlined_call_operand.hbm [shape: bf16[32,128], index: 2, kind: input, shape index: {}]   ;;  %s1357_s3 = inlined_call_operand.hbm [shape: bf16[8,8,32], index: 3, kind: output, shape index: {}]  }
   0x1   :  { %9 = vsyncpa [#allocation8], 0 }
   0x2   :  { %10 = vsyncpa [#allocation6], 0  ;;  %s1186_s12 = smov [#allocation7]   ;;  %s1187_s14 = smov [#allocation4]  }
   0x3   :  { %s29_s13 = sshll.u32 %s1186_s12, 4  ;;  %s16_s15 = sshll.u32 %s1187_s14, 4  ;;  %s30_s13 = int_to_ptr.vmem [resolvable:$true] %s29_s13  ;;  %s17_s15 = int_to_ptr.vmem [resolvable:$true] %s16_s15 }
   0x4   :  { %s1108_s16 = scalar_lea.vmem %s30_s13, 128  ;;  %p1113_p1 = scmp.lt.s32.totalorder %s30_s13, %s30_s13 }
   0x5   :  { %p1109_p0 = scmp.ne.s32.totalorder %s30_s13, %s1108_s16  ;;  %p1114_p2 = scmp.lt.s32.totalorder %s1108_s16, %s1108_s16 }
   0x7   :  { %p1115_p3 = por %p1114_p2, %p1113_p1 }
   0x9   :  { %p1116_p4 = pnand %p1115_p3, %p1109_p0 }
   0xb   :  { %1119 = shalt.err (!%p1116_p4)
}
   0xc   :  { %32 = dma.hbm_to_vmem [thread:$0]  %s1355_s1, 128, %s30_s13, [#allocation8]  }
   0xd   :  { %s1128_s19 = scalar_lea.vmem %s17_s15, 1024  ;;  %p1133_p6 = scmp.lt.s32.totalorder %s17_s15, %s17_s15 }
   0xe   :  { %p1129_p5 = scmp.ne.s32.totalorder %s17_s15, %s1128_s19  ;;  %p1134_p7 = scmp.lt.s32.totalorder %s1128_s19, %s1128_s19 }
  0x10   :  { %p1135_p8 = por %p1134_p7, %p1133_p6 }
  0x12   :  { %p1136_p9 = pnand %p1135_p8, %p1129_p5 }
  0x14   :  { %1139 = shalt.err (!%p1136_p9)
}
  0x15   :  { %s1188_s20 = smov 128   ;;  %s1189_s21 = smov 8  }
  0x16   :  { %22 = dma.hbm_to_vmem [thread:$0]  %s1354_s0, 1024, %s17_s15, [#allocation5], %s1188_s20, %s1188_s20, %s1189_s21  }
  0x17   :  { %s1190_s24 = smov [#allocation9]  }
  0x18   :  { %s38_s25 = sshll.u32 %s1190_s24, 4  ;;  %s39_s25 = int_to_ptr.vmem [resolvable:$true] %s38_s25 }
  0x19   :  { %s1148_s26 = scalar_lea.vmem %s39_s25, 256  ;;  %p1153_p11 = scmp.lt.s32.totalorder %s39_s25, %s39_s25 }
  0x1a   :  { %p1149_p10 = scmp.ne.s32.totalorder %s39_s25, %s1148_s26  ;;  %p1154_p12 = scmp.lt.s32.totalorder %s1148_s26, %s1148_s26 }
  0x1c   :  { %p1155_p13 = por %p1154_p12, %p1153_p11 }
  0x1e   :  { %p1156_p0 = pnand %p1155_p13, %p1149_p10 }
  0x20   :  { %1159 = shalt.err (!%p1156_p0)
}
  0x21   :  { %s1191_s1 = smov 64   ;;  %s1192_s27 = smov 4  }
  0x22   :  { %44 = dma.hbm_to_vmem [thread:$0]  %s1356_s2, 256, %s39_s25, [#allocation8], %s1191_s1, %s1191_s1, %s1192_s27  }
  0x23   :  { %1180 = dma.done.wait [#allocation5], 1024  }
  0x24   :  { %1181 = vsyncadd [#allocation5], 4294966272 }
  0x25   :  { %1182 = dma.done.wait [#allocation8], 384  }
  0x26   :  { %1183 = vsyncadd [#allocation8], 4294966912  ;;  %vm60_vm0 = vcmask 261120   ;;  %v1193_v0 = vmov 0.0   ;;  %vm1194_vm1 = vmmov 0   ;;  %v1020_v1 = vld [vmem:[#allocation9 + $0x8] sm:$0xff]  }
  0x27   :  { %944 = vmatprep.subr.bf16.mxu0 %v1193_v0  ;;  %948 = vmatprep.mubr.msk.bf16.mxu0 %vm1194_vm1, %v1193_v0  ;;  %62 = vst.msk [vmem:[#allocation3] sm:$0xff] %vm60_vm0, %v1193_v0  ;;  %v1021_v2 = vld [vmem:[#allocation9] sm:$0xff]   ;;  %v59_v3 = vld [vmem:[#allocation7] sm:$0xff]  ;;  %s1195_s0 = smov 32   ;;  %v1022_v24 = vld [vmem:[#allocation9 + $0x8] sm:$0xff]   ;;  %vm163_vm2 = vcmask 257024  }
  0x28   :  { %952 = vmatprep.subr.bf16.mxu1 %v1193_v0  ;;  %956 = vmatprep.mubr.msk.bf16.mxu1 %vm1194_vm1, %v1193_v0  ;;  %61 = vst.msk [vmem:[#allocation2] sm:$0xff] %vm60_vm0, %v59_v3  ;;  %v65_v6 = vld [vmem:[#allocation4] sm:$0xff]  ;;  %v1023_v25 = vld [vmem:[#allocation9] sm:$0xff]   ;;  %v1024_v47 = vld [vmem:[#allocation9 + $0x8] sm:$0xff]   ;;  %s1196_s2 = smov 96   ;;  %s1197_s30 = smov [#allocation10]  }
  0x29   :  { %945 = vmatpush3.bf16.msra.mxu0 %v1020_v1  ;;  %953 = vmatpush3.bf16.msra.mxu1 %v1022_v24  ;;  %v166_v31 = vld [vmem:[#allocation4 + $0x8] sm:$0xff]  ;;  %v263_v54 = vld [vmem:[#allocation4 + $0x10] sm:$0xff]  ;;  %s859_s4 = sshll.u32 %s1197_s30, 4  ;;  %s860_s4 = int_to_ptr.vmem [resolvable:$true] %s859_s4 }
  0x2a   :  { %946 = vmatprep.subr.bf16.mxu0 %v1193_v0  ;;  %954 = vmatprep.subr.bf16.mxu1 %v1193_v0  ;;  %v1025_v48 = vld [vmem:[#allocation9] sm:$0xff]   ;;  %s1160_s5 = scalar_lea.vmem %s860_s4, 512  ;;  %p1165_p2 = scmp.lt.s32.totalorder %s860_s4, %s860_s4 }
  0x2b   :  { %p1161_p1 = scmp.ne.s32.totalorder %s860_s4, %s1160_s5  ;;  %p1166_p3 = scmp.lt.s32.totalorder %s1160_s5, %s1160_s5 }
  0x2d   :  { %947 = vmatpush3.bf16.msra.mxu0 %v1021_v2  ;;  %955 = vmatpush3.bf16.msra.mxu1 %v1023_v25  ;;  %p1167_p4 = por %p1166_p3, %p1165_p2 }
  0x2e   :  { %960 = vmatprep.subr.bf16.mxu0 %v1193_v0  ;;  %v64_v13 = vld [vmem:[#allocation3] sm:$0xff]  ;;  %968 = vmatprep.subr.bf16.mxu1 %v1193_v0 }
  0x2f   :  { %v63_v4 = vld [vmem:[#allocation2] sm:$0xff]  ;;  %p1168_p5 = pnand %p1167_p4, %p1161_p1 }
  0x30   :  { %v66_v5 = vpack.c.bf16 %v63_v4, %v63_v4 }
  0x32   :  { %949 = vmatmul.mubr.msk.bf16.vlgmr.msra.gmra.mxu0 %vm60_vm0, %v66_v5 }
  0x33   :  { %964 = vmatprep.mubr.msk.bf16.mxu0 %vm1194_vm1, %v1193_v0  ;;  %961 = vmatpush3.bf16.msra.mxu0 %v1024_v47 }
  0x34   :  { %962 = vmatprep.subr.bf16.mxu0 %v1193_v0 }
  0x37   :  { %963 = vmatpush3.bf16.msra.mxu0 %v1025_v48 }
  0x38   :  { %976 = vmatprep.subr.bf16.mxu0 %v1193_v0 }
  0xf2   :  { %v121_v7 = vpop.f32.mrf.mxu0 }
  0xf3   :  { %v127_v8 = vadd.f32 %v121_v7, %v65_v6  ;;  %v1026_v7 = vld [vmem:[#allocation9 + $0x8] sm:$0xff]  }
  0xf4   :  { %v950_v9 = vpop.f32.mrf.mxu0 }
  0xf5   :  { %1036 = vtanh.f32 %v127_v8  ;;  %v875_v14 = vmul.f32 -1.442695, %v127_v8  ;;  %v1027_v8 = vld [vmem:[#allocation9] sm:$0xff]  }
  0xf6   :  { %v124_v10 = vpop.f32.mrf.mxu0 }
  0xf7   :  { %1038 = vpow2.f32 %v875_v14  ;;  %v360_v14 = vld [vmem:[#allocation4 + $0x18] sm:$0xff] }
  0xf8   :  { %v951_v11 = vpop.f32.mrf.mxu0 }
 0x102   :  { %v1037_v12 = vpop.eup %1036 }
 0x103   :  { %141 = vrot.lane.b32.xlu0 %v1037_v12, %s1191_s1 }
 0x104   :  { %v1039_v15 = vpop.eup %1038 }
 0x105   :  { %v131_v16 = vadd.f32 1.0, %v1039_v15 }
 0x107   :  { %136 = vrot.lane.b32.xlu0 %v64_v13, %s1195_s0  ;;  %1040 = vrcp.f32 %v131_v16 }
 0x114   :  { %v1041_v17 = vpop.eup %1040 }
 0x175   :  { %v142_v18 = vpop.permute.xlu0 %141 }
 0x176   :  { %v144_v19 = vmul.f32 %v1041_v17, %v142_v18 }
 0x178   :  { %146 = vrot.lane.b32.xlu1 %v144_v19, %s1195_s0 }
 0x179   :  { %v137_v20 = vpop.permute.xlu0 %136 }
 0x17a   :  { %v139_v21 = vmul.f32 %v1041_v17, %v137_v20 }
 0x1ea   :  { %v147_v22 = vpop.permute.xlu1 %146 }
 0x1eb   :  { %v149_v23 = vadd.f32 %v147_v22, %v139_v21 }
 0x1ed   :  { %1042 = vtanh.f32 %v149_v23 }
 0x1fa   :  { %v1043_v26 = vpop.eup %1042 }
 0x1fb   :  { %152 = vrot.lane.b32.xlu1 %v1043_v26, %s1191_s1 }
 0x26d   :  { %v153_v27 = vpop.permute.xlu1 %152 }
 0x26e   :  { %v155_v28 = vmul.f32 %v1041_v17, %v153_v27 }
 0x270   :  { %v1250_v29 = vpack.c.bf16 %v155_v28, %v155_v28 }
 0x272   :  { %171 = vrot.lane.b32.xlu0 %v1250_v29, %s1195_s0 }
 0x2e4   :  { %v172_v30 = vpop.permute.xlu0 %171 }
 0x2e5   :  { %957 = vmatmul.mubr.msk.bf16.vlgmr.msra.gmra.mxu1 %vm60_vm0, %v172_v30 }
 0x2e6   :  { %972 = vmatprep.mubr.msk.bf16.mxu1 %vm1194_vm1, %v1193_v0  ;;  %969 = vmatpush3.bf16.msra.mxu1 %v1026_v7 }
 0x2e7   :  { %970 = vmatprep.subr.bf16.mxu1 %v1193_v0 }
 0x2ea   :  { %971 = vmatpush3.bf16.msra.mxu1 %v1027_v8 }
 0x2eb   :  { %984 = vmatprep.subr.bf16.mxu1 %v1193_v0 }
 0x3a5   :  { %v222_v32 = vpop.f32.mrf.mxu1 }
 0x3a6   :  { %v228_v33 = vadd.f32 %v222_v32, %v166_v31  ;;  %v1028_v31 = vld [vmem:[#allocation9 + $0x8] sm:$0xff]   ;;  %v1029_v32 = vld [vmem:[#allocation9] sm:$0xff]  }
 0x3a7   :  { %v958_v34 = vpop.f32.mrf.mxu1 }
 0x3a8   :  { %1044 = vtanh.f32 %v228_v33  ;;  %v880_v38 = vmul.f32 -1.442695, %v228_v33 }
 0x3a9   :  { %v225_v35 = vpop.f32.mrf.mxu1 }
 0x3aa   :  { %1046 = vpow2.f32 %v880_v38  ;;  %v457_v38 = vld [vmem:[#allocation4 + $0x20] sm:$0xff] }
 0x3ab   :  { %v959_v36 = vpop.f32.mrf.mxu1 }
 0x3b5   :  { %v1045_v37 = vpop.eup %1044 }
 0x3b6   :  { %238 = vrot.lane.b32.xlu1 %v1045_v37, %s1191_s1 }
 0x3b7   :  { %v1047_v39 = vpop.eup %1046 }
 0x3b8   :  { %v232_v40 = vadd.f32 1.0, %v1047_v39 }
 0x3ba   :  { %1048 = vrcp.f32 %v232_v40 }
 0x3c7   :  { %v1049_v41 = vpop.eup %1048 }
 0x3c8   :  { %v236_v44 = vmul.f32 %v1049_v41, %v149_v23 }
 0x428   :  { %v239_v42 = vpop.permute.xlu1 %238 }
 0x429   :  { %v241_v43 = vmul.f32 %v1049_v41, %v239_v42 }
 0x42b   :  { %243 = vrot.lane.b32.xlu0 %v241_v43, %s1195_s0 }
 0x49d   :  { %v244_v45 = vpop.permute.xlu0 %243 }
 0x49e   :  { %v246_v46 = vadd.f32 %v244_v45, %v236_v44 }
 0x4a0   :  { %1050 = vtanh.f32 %v246_v46 }
 0x4ad   :  { %v1051_v49 = vpop.eup %1050 }
 0x4ae   :  { %249 = vrot.lane.b32.xlu1 %v1051_v49, %s1191_s1 }
 0x520   :  { %v250_v50 = vpop.permute.xlu1 %249 }
 0x521   :  { %v252_v51 = vmul.f32 %v1049_v41, %v250_v50 }
 0x523   :  { %v1262_v52 = vpack.c.bf16 %v252_v51, %v252_v51 }
 0x525   :  { %268 = vrot.lane.b32.xlu0 %v1262_v52, %s1195_s0 }
 0x597   :  { %v269_v53 = vpop.permute.xlu0 %268 }
 0x598   :  { %965 = vmatmul.mubr.msk.bf16.vlgmr.msra.gmra.mxu0 %vm60_vm0, %v269_v53 }
 0x599   :  { %980 = vmatprep.mubr.msk.bf16.mxu0 %vm1194_vm1, %v1193_v0  ;;  %977 = vmatpush3.bf16.msra.mxu0 %v1028_v31 }
 0x59a   :  { %978 = vmatprep.subr.bf16.mxu0 %v1193_v0 }
 0x59d   :  { %979 = vmatpush3.bf16.msra.mxu0 %v1029_v32 }
 0x59e   :  { %992 = vmatprep.subr.bf16.mxu0 %v1193_v0 }
 0x658   :  { %v319_v55 = vpop.f32.mrf.mxu0 }
 0x659   :  { %v325_v56 = vadd.f32 %v319_v55, %v263_v54  ;;  %v1030_v55 = vld [vmem:[#allocation9 + $0x8] sm:$0xff]  }
 0x65a   :  { %v966_v57 = vpop.f32.mrf.mxu0 }
 0x65b   :  { %1052 = vtanh.f32 %v325_v56  ;;  %v885_v61 = vmul.f32 -1.442695, %v325_v56  ;;  %v1031_v56 = vld [vmem:[#allocation9] sm:$0xff]  }
 0x65c   :  { %v322_v58 = vpop.f32.mrf.mxu0 }
 0x65d   :  { %1054 = vpow2.f32 %v885_v61 }
 0x65e   :  { %v967_v59 = vpop.f32.mrf.mxu0 }
 0x668   :  { %v1053_v60 = vpop.eup %1052 }
 0x669   :  { %335 = vrot.lane.b32.xlu1 %v1053_v60, %s1191_s1 }
 0x66a   :  { %v1055_v62 = vpop.eup %1054 }
 0x66b   :  { %v329_v63 = vadd.f32 1.0, %v1055_v62  ;;  %v554_v62 = vld [vmem:[#allocation4 + $0x28] sm:$0xff] }
 0x66d   :  { %1056 = vrcp.f32 %v329_v63 }
 0x67a   :  { %v1057_v1 = vpop.eup %1056 }
 0x67b   :  { %v333_v4 = vmul.f32 %v1057_v1, %v246_v46 }
 0x6db   :  { %v336_v2 = vpop.permute.xlu1 %335 }
 0x6dc   :  { %v338_v3 = vmul.f32 %v1057_v1, %v336_v2 }
 0x6de   :  { %340 = vrot.lane.b32.xlu0 %v338_v3, %s1195_s0 }
 0x750   :  { %v341_v5 = vpop.permute.xlu0 %340 }
 0x751   :  { %v343_v6 = vadd.f32 %v341_v5, %v333_v4 }
 0x753   :  { %1058 = vtanh.f32 %v343_v6 }
 0x760   :  { %v1059_v9 = vpop.eup %1058 }
 0x761   :  { %346 = vrot.lane.b32.xlu1 %v1059_v9, %s1191_s1 }
 0x7d3   :  { %v347_v10 = vpop.permute.xlu1 %346 }
 0x7d4   :  { %v349_v11 = vmul.f32 %v1057_v1, %v347_v10 }
 0x7d6   :  { %v1274_v12 = vpack.c.bf16 %v349_v11, %v349_v11 }
 0x7d8   :  { %365 = vrot.lane.b32.xlu0 %v1274_v12, %s1195_s0 }
 0x84a   :  { %v366_v13 = vpop.permute.xlu0 %365 }
 0x84b   :  { %973 = vmatmul.mubr.msk.bf16.vlgmr.msra.gmra.mxu1 %vm60_vm0, %v366_v13 }
 0x84c   :  { %988 = vmatprep.mubr.msk.bf16.mxu1 %vm1194_vm1, %v1193_v0  ;;  %985 = vmatpush3.bf16.msra.mxu1 %v1030_v55 }
 0x84d   :  { %986 = vmatprep.subr.bf16.mxu1 %v1193_v0 }
 0x850   :  { %987 = vmatpush3.bf16.msra.mxu1 %v1031_v56 }
 0x851   :  { %1000 = vmatprep.subr.bf16.mxu1 %v1193_v0 }
 0x90b   :  { %v416_v15 = vpop.f32.mrf.mxu1 }
 0x90c   :  { %v422_v16 = vadd.f32 %v416_v15, %v360_v14 }
 0x90d   :  { %v974_v17 = vpop.f32.mrf.mxu1 }
 0x90e   :  { %1060 = vtanh.f32 %v422_v16  ;;  %v890_v21 = vmul.f32 -1.442695, %v422_v16  ;;  %v1032_v16 = vld [vmem:[#allocation9 + $0x8] sm:$0xff]   ;;  %v1033_v17 = vld [vmem:[#allocation9] sm:$0xff]  }
 0x90f   :  { %v419_v18 = vpop.f32.mrf.mxu1 }
 0x910   :  { %1062 = vpow2.f32 %v890_v21 }
 0x911   :  { %v975_v19 = vpop.f32.mrf.mxu1 }
 0x91b   :  { %v1061_v20 = vpop.eup %1060 }
 0x91c   :  { %432 = vrot.lane.b32.xlu1 %v1061_v20, %s1191_s1 }
 0x91d   :  { %v1063_v22 = vpop.eup %1062 }
 0x91e   :  { %v426_v23 = vadd.f32 1.0, %v1063_v22 }
 0x920   :  { %1064 = vrcp.f32 %v426_v23  ;;  %v651_v23 = vld [vmem:[#allocation4 + $0x30] sm:$0xff] }
 0x92d   :  { %v1065_v24 = vpop.eup %1064 }
 0x92e   :  { %v430_v27 = vmul.f32 %v1065_v24, %v343_v6 }
 0x98e   :  { %v433_v25 = vpop.permute.xlu1 %432 }
 0x98f   :  { %v435_v26 = vmul.f32 %v1065_v24, %v433_v25 }
 0x991   :  { %437 = vrot.lane.b32.xlu0 %v435_v26, %s1195_s0 }
 0xa03   :  { %v438_v28 = vpop.permute.xlu0 %437 }
 0xa04   :  { %v440_v30 = vadd.f32 %v438_v28, %v430_v27 }
 0xa06   :  { %1066 = vtanh.f32 %v440_v30 }
 0xa13   :  { %v1067_v33 = vpop.eup %1066 }
 0xa14   :  { %443 = vrot.lane.b32.xlu1 %v1067_v33, %s1191_s1 }
 0xa86   :  { %v444_v34 = vpop.permute.xlu1 %443 }
 0xa87   :  { %v446_v35 = vmul.f32 %v1065_v24, %v444_v34 }
 0xa89   :  { %v1286_v36 = vpack.c.bf16 %v446_v35, %v446_v35 }
 0xa8b   :  { %462 = vrot.lane.b32.xlu0 %v1286_v36, %s1195_s0 }
 0xafd   :  { %v463_v37 = vpop.permute.xlu0 %462 }
 0xafe   :  { %981 = vmatmul.mubr.msk.bf16.vlgmr.msra.gmra.mxu0 %vm60_vm0, %v463_v37 }
 0xaff   :  { %996 = vmatprep.mubr.msk.bf16.mxu0 %vm1194_vm1, %v1193_v0  ;;  %993 = vmatpush3.bf16.msra.mxu0 %v1032_v16 }
 0xb00   :  { %994 = vmatprep.subr.bf16.mxu0 %v1193_v0 }
 0xb03   :  { %995 = vmatpush3.bf16.msra.mxu0 %v1033_v17 }
 0xbbe   :  { %v513_v39 = vpop.f32.mrf.mxu0 }
 0xbbf   :  { %v519_v40 = vadd.f32 %v513_v39, %v457_v38 }
 0xbc0   :  { %v982_v41 = vpop.f32.mrf.mxu0 }
 0xbc1   :  { %1068 = vtanh.f32 %v519_v40  ;;  %v895_v45 = vmul.f32 -1.442695, %v519_v40  ;;  %v1034_v41 = vld [vmem:[#allocation9 + $0x8] sm:$0xff]  }
 0xbc2   :  { %v516_v42 = vpop.f32.mrf.mxu0 }
 0xbc3   :  { %1070 = vpow2.f32 %v895_v45  ;;  %v1035_v42 = vld [vmem:[#allocation9] sm:$0xff]  }
 0xbc4   :  { %v983_v43 = vpop.f32.mrf.mxu0 }
 0xbce   :  { %v1069_v44 = vpop.eup %1068 }
 0xbcf   :  { %529 = vrot.lane.b32.xlu1 %v1069_v44, %s1191_s1 }
 0xbd0   :  { %v1071_v46 = vpop.eup %1070 }
 0xbd1   :  { %v523_v47 = vadd.f32 1.0, %v1071_v46 }
 0xbd3   :  { %1072 = vrcp.f32 %v523_v47 }
 0xbe0   :  { %v1073_v48 = vpop.eup %1072 }
 0xbe1   :  { %v527_v51 = vmul.f32 %v1073_v48, %v440_v30 }
 0xc41   :  { %v530_v49 = vpop.permute.xlu1 %529 }
 0xc42   :  { %v532_v50 = vmul.f32 %v1073_v48, %v530_v49 }
 0xc44   :  { %534 = vrot.lane.b32.xlu0 %v532_v50, %s1195_s0 }
 0xcb6   :  { %v535_v53 = vpop.permute.xlu0 %534 }
 0xcb7   :  { %v537_v54 = vadd.f32 %v535_v53, %v527_v51 }
 0xcb9   :  { %1074 = vtanh.f32 %v537_v54 }
 0xcc6   :  { %v1075_v57 = vpop.eup %1074 }
 0xcc7   :  { %540 = vrot.lane.b32.xlu1 %v1075_v57, %s1191_s1 }
 0xd39   :  { %v541_v58 = vpop.permute.xlu1 %540 }
 0xd3a   :  { %v543_v59 = vmul.f32 %v1073_v48, %v541_v58  ;;  %v748_v48 = vld [vmem:[#allocation4 + $0x38] sm:$0xff] }
 0xd3c   :  { %v1298_v60 = vpack.c.bf16 %v543_v59, %v543_v59 }
 0xd3e   :  { %559 = vrot.lane.b32.xlu0 %v1298_v60, %s1195_s0 }
 0xdb0   :  { %v560_v61 = vpop.permute.xlu0 %559 }
 0xdb1   :  { %989 = vmatmul.mubr.msk.bf16.vlgmr.msra.gmra.mxu1 %vm60_vm0, %v560_v61 }
 0xdb2   :  { %1004 = vmatprep.mubr.msk.bf16.mxu1 %vm1194_vm1, %v1193_v0  ;;  %1001 = vmatpush3.bf16.msra.mxu1 %v1034_v41 }
 0xdb3   :  { %1002 = vmatprep.subr.bf16.mxu1 %v1193_v0 }
 0xdb6   :  { %1003 = vmatpush3.bf16.msra.mxu1 %v1035_v42 }
 0xe71   :  { %v610_v63 = vpop.f32.mrf.mxu1 }
 0xe72   :  { %v616_v1 = vadd.f32 %v610_v63, %v554_v62 }
 0xe73   :  { %v990_v2 = vpop.f32.mrf.mxu1 }
 0xe74   :  { %1076 = vtanh.f32 %v616_v1  ;;  %v900_v6 = vmul.f32 -1.442695, %v616_v1 }
 0xe75   :  { %v613_v3 = vpop.f32.mrf.mxu1 }
 0xe76   :  { %1078 = vpow2.f32 %v900_v6 }
 0xe77   :  { %v991_v4 = vpop.f32.mrf.mxu1 }
 0xe81   :  { %v1077_v5 = vpop.eup %1076 }
 0xe82   :  { %626 = vrot.lane.b32.xlu1 %v1077_v5, %s1191_s1 }
 0xe83   :  { %v1079_v7 = vpop.eup %1078 }
 0xe84   :  { %v620_v8 = vadd.f32 1.0, %v1079_v7 }
 0xe86   :  { %1080 = vrcp.f32 %v620_v8 }
 0xe93   :  { %v1081_v9 = vpop.eup %1080 }
 0xe94   :  { %v624_v13 = vmul.f32 %v1081_v9, %v537_v54 }
 0xef4   :  { %v627_v10 = vpop.permute.xlu1 %626 }
 0xef5   :  { %v629_v11 = vmul.f32 %v1081_v9, %v627_v10 }
 0xef7   :  { %631 = vrot.lane.b32.xlu0 %v629_v11, %s1195_s0 }
 0xf69   :  { %v632_v14 = vpop.permute.xlu0 %631 }
 0xf6a   :  { %v634_v15 = vadd.f32 %v632_v14, %v624_v13 }
 0xf6c   :  { %1082 = vtanh.f32 %v634_v15 }
 0xf79   :  { %v1083_v18 = vpop.eup %1082 }
 0xf7a   :  { %637 = vrot.lane.b32.xlu1 %v1083_v18, %s1191_s1 }
 0xfec   :  { %v638_v19 = vpop.permute.xlu1 %637 }
 0xfed   :  { %v640_v20 = vmul.f32 %v1081_v9, %v638_v19 }
 0xfef   :  { %v1309_v21 = vpack.c.bf16 %v640_v20, %v640_v20 }
 0xff1   :  { %656 = vrot.lane.b32.xlu0 %v1309_v21, %s1195_s0 }
0x1063   :  { %v657_v22 = vpop.permute.xlu0 %656 }
0x1064   :  { %997 = vmatmul.mubr.msk.bf16.vlgmr.msra.gmra.mxu0 %vm60_vm0, %v657_v22 }
0x1124   :  { %v707_v24 = vpop.f32.mrf.mxu0 }
0x1125   :  { %v713_v25 = vadd.f32 %v707_v24, %v651_v23 }
0x1126   :  { %v998_v26 = vpop.f32.mrf.mxu0 }
0x1127   :  { %1084 = vtanh.f32 %v713_v25  ;;  %v905_v31 = vmul.f32 -1.442695, %v713_v25 }
0x1128   :  { %v710_v27 = vpop.f32.mrf.mxu0 }
0x1129   :  { %1086 = vpow2.f32 %v905_v31 }
0x112a   :  { %v999_v28 = vpop.f32.mrf.mxu0 }
0x1134   :  { %v1085_v30 = vpop.eup %1084 }
0x1135   :  { %723 = vrot.lane.b32.xlu1 %v1085_v30, %s1191_s1 }
0x1136   :  { %v1087_v32 = vpop.eup %1086 }
0x1137   :  { %v717_v33 = vadd.f32 1.0, %v1087_v32 }
0x1139   :  { %1088 = vrcp.f32 %v717_v33 }
0x1146   :  { %v1089_v34 = vpop.eup %1088 }
0x1147   :  { %v721_v38 = vmul.f32 %v1089_v34, %v634_v15 }
0x11a7   :  { %v724_v35 = vpop.permute.xlu1 %723 }
0x11a8   :  { %v726_v37 = vmul.f32 %v1089_v34, %v724_v35 }
0x11aa   :  { %728 = vrot.lane.b32.xlu0 %v726_v37, %s1195_s0 }
0x121c   :  { %v729_v39 = vpop.permute.xlu0 %728 }
0x121d   :  { %v731_v40 = vadd.f32 %v729_v39, %v721_v38 }
0x121f   :  { %1090 = vtanh.f32 %v731_v40 }
0x122c   :  { %v1091_v43 = vpop.eup %1090 }
0x122d   :  { %734 = vrot.lane.b32.xlu1 %v1091_v43, %s1191_s1 }
0x129f   :  { %v735_v44 = vpop.permute.xlu1 %734 }
0x12a0   :  { %v737_v45 = vmul.f32 %v1089_v34, %v735_v44 }
0x12a2   :  { %v738_v46 = vpack.c.bf16 %v737_v45, %v737_v45 }
0x12a4   :  { %753 = vrot.lane.b32.xlu0 %v738_v46, %s1195_s0 }
0x1316   :  { %v754_v47 = vpop.permute.xlu0 %753 }
0x1317   :  { %1005 = vmatmul.mubr.msk.bf16.vlgmr.msra.gmra.mxu1 %vm60_vm0, %v754_v47 }
0x13d7   :  { %v804_v49 = vpop.f32.mrf.mxu1 }
0x13d8   :  { %v810_v50 = vadd.f32 %v804_v49, %v748_v48 }
0x13d9   :  { %v1006_v51 = vpop.f32.mrf.mxu1 }
0x13da   :  { %1092 = vtanh.f32 %v810_v50  ;;  %v910_v55 = vmul.f32 -1.442695, %v810_v50 }
0x13db   :  { %v807_v53 = vpop.f32.mrf.mxu1 }
0x13dc   :  { %1094 = vpow2.f32 %v910_v55 }
0x13dd   :  { %v1007_v54 = vpop.f32.mrf.mxu1 }
0x13e7   :  { %v1093_v0 = vpop.eup %1092 }
0x13e8   :  { %820 = vrot.lane.b32.xlu1 %v1093_v0, %s1191_s1 }
0x13e9   :  { %v1095_v56 = vpop.eup %1094 }
0x13ea   :  { %v814_v57 = vadd.f32 1.0, %v1095_v56 }
0x13ec   :  { %1096 = vrcp.f32 %v814_v57 }
0x13f9   :  { %v1097_v58 = vpop.eup %1096 }
0x13fa   :  { %v818_v62 = vmul.f32 %v1097_v58, %v731_v40 }
0x145a   :  { %v821_v59 = vpop.permute.xlu1 %820 }
0x145b   :  { %v823_v61 = vmul.f32 %v1097_v58, %v821_v59 }
0x145d   :  { %825 = vrot.lane.b32.xlu0 %v823_v61, %s1195_s0 }
0x1461   :  { %160 = vrot.lane.b32.xlu0 %v1250_v29, %s1195_s0 }
0x1465   :  { %354 = vrot.lane.b32.xlu0 %v1274_v12, %s1195_s0 }
0x1469   :  { %548 = vrot.lane.b32.xlu0 %v1298_v60, %s1195_s0 }
0x146d   :  { %742 = vrot.lane.b32.xlu0 %v738_v46, %s1195_s0 }
0x14cf   :  { %v826_v63 = vpop.permute.xlu0 %825 }
0x14d0   :  { %v828_v1 = vadd.f32 %v826_v63, %v818_v62 }
0x14d2   :  { %1098 = vtanh.f32 %v828_v1 }
0x14d3   :  { %v161_v2 = vpop.permute.xlu0 %160 }
0x14d4   :  { %164 = vst.msk [vmem:[#allocation10] sm:$0xf] %vm163_vm2, %v161_v2 }
0x14d7   :  { %v355_v3 = vpop.permute.xlu0 %354 }
0x14d8   :  { %358 = vst.msk [vmem:[#allocation10 + $0x8] sm:$0xf] %vm163_vm2, %v355_v3 }
0x14db   :  { %v549_v29 = vpop.permute.xlu0 %548 }
0x14dc   :  { %552 = vst.msk [vmem:[#allocation10 + $0x10] sm:$0xf] %vm163_vm2, %v549_v29 }
0x14df   :  { %v1099_v12 = vpop.eup %1098  ;;  %v743_v4 = vpop.permute.xlu0 %742 }
0x14e0   :  { %746 = vst.msk [vmem:[#allocation10 + $0x18] sm:$0xf] %vm163_vm2, %v743_v4  ;;  %831 = vrot.lane.b32.xlu1 %v1099_v12, %s1191_s1 }
0x14e4   :  { %257 = vrot.lane.b32.xlu1 %v1262_v52, %s1195_s0 }
0x14e8   :  { %451 = vrot.lane.b32.xlu1 %v1286_v36, %s1195_s0 }
0x14ec   :  { %645 = vrot.lane.b32.xlu1 %v1309_v21, %s1195_s0 }
0x1552   :  { %v832_v60 = vpop.permute.xlu1 %831 }
0x1553   :  { %v834_v5 = vmul.f32 %v1097_v58, %v832_v60 }
0x1555   :  { %v919_v6 = vpack.c.bf16 %v834_v5, %v834_v5  ;;  %845 = vrot.lane.b32.xlu0 %v834_v5, %s1195_s0 }
0x1556   :  { %v258_v7 = vpop.permute.xlu1 %257 }
0x1557   :  { %261 = vst.msk [vmem:[#allocation10 + $0x4] sm:$0xf] %vm163_vm2, %v258_v7  ;;  %839 = vrot.lane.b32.xlu1 %v919_v6, %s1195_s0 }
0x155a   :  { %v452_v8 = vpop.permute.xlu1 %451 }
0x155b   :  { %455 = vst.msk [vmem:[#allocation10 + $0xc] sm:$0xf] %vm163_vm2, %v452_v8  ;;  %850 = vrot.lane.b32.xlu1 %v828_v1, %s1196_s2 }
0x155e   :  { %v646_v52 = vpop.permute.xlu1 %645 }
0x155f   :  { %649 = vst.msk [vmem:[#allocation10 + $0x14] sm:$0xf] %vm163_vm2, %v646_v52 }
0x15c7   :  { %v846_v36 = vpop.permute.xlu0 %845 }
0x15c8   :  { %848 = vst.msk [vmem:[#allocation2] sm:$0xff] %vm60_vm0, %v846_v36 }
0x15c9   :  { %v840_v9 = vpop.permute.xlu1 %839 }
0x15ca   :  { %843 = vst.msk [vmem:[#allocation10 + $0x1c] sm:$0xf] %vm163_vm2, %v840_v9 }
0x15cb   :  { %1171 = shalt.err (!%p1168_p5)
}
0x15cc   :  { %865 = dma.vmem_to_hbm [thread:$0]  %s860_s4, 512, %s1357_s3, [#allocation6], %s1191_s1, %s1191_s1, %s1192_s27  }
0x15cd   :  { %v851_v10 = vpop.permute.xlu1 %850 }
0x15ce   :  { %853 = vst.msk [vmem:[#allocation3] sm:$0xff] %vm60_vm0, %v851_v10 }
0x15cf   :  { %1184 = dma.done.wait [#allocation6], 512  }
0x15d0   :  { %1185 = vsyncadd [#allocation6], 4294966784 }
0x15d1   :  { %869 = vsyncpa [#allocation5], 1 }
0x15d2   :  { %870 = vsyncpa [#allocation8], 1 }
0x15d3   :  { %871 = vsyncpa [#allocation6], 1 }

// kernel: tpu_custom_call.1
= control target key start
LH: loop header
LB: loop body
LE: loop exit
PB: predicated region body
PF: predicated region fallthrough
CT: control target
= control target key end

     0   :  { %8 = vsyncpa [#allocation5], 0  ;;  %s1354_s0 = inlined_call_operand.hbm [shape: f32[8,8,128], index: 0, kind: input, shape index: {}]   ;;  %s1355_s1 = inlined_call_operand.hbm [shape: f32[8,32], index: 1, kind: input, shape index: {}]   ;;  %s1356_s2 = inlined_call_operand.hbm [shape: bf16[32,128], index: 2, kind: input, shape index: {}]   ;;  %s1357_s3 = inlined_call_operand.hbm [shape: bf16[8,8,32], index: 3, kind: output, shape index: {}]  }
   0x1   :  { %9 = vsyncpa [#allocation8], 0 }
   0x2   :  { %10 = vsyncpa [#allocation6], 0  ;;  %s1186_s12 = smov [#allocation7]   ;;  %s1187_s14 = smov [#allocation4]  }
   0x3   :  { %s29_s13 = sshll.u32 %s1186_s12, 4  ;;  %s16_s15 = sshll.u32 %s1187_s14, 4  ;;  %s30_s13 = int_to_ptr.vmem [resolvable:$true] %s29_s13  ;;  %s17_s15 = int_to_ptr.vmem [resolvable:$true] %s16_s15 }
   0x4   :  { %s1108_s16 = scalar_lea.vmem %s30_s13, 128  ;;  %p1113_p1 = scmp.lt.s32.totalorder %s30_s13, %s30_s13 }
   0x5   :  { %p1109_p0 = scmp.ne.s32.totalorder %s30_s13, %s1108_s16  ;;  %p1114_p2 = scmp.lt.s32.totalorder %s1108_s16, %s1108_s16 }
   0x7   :  { %p1115_p3 = por %p1114_p2, %p1113_p1 }
   0x9   :  { %p1116_p4 = pnand %p1115_p3, %p1109_p0 }
   0xb   :  { %1119 = shalt.err (!%p1116_p4)
}
   0xc   :  { %32 = dma.hbm_to_vmem [thread:$0]  %s1355_s1, 128, %s30_s13, [#allocation8]  }
   0xd   :  { %s1128_s19 = scalar_lea.vmem %s17_s15, 1024  ;;  %p1133_p6 = scmp.lt.s32.totalorder %s17_s15, %s17_s15 }
   0xe   :  { %p1129_p5 = scmp.ne.s32.totalorder %s17_s15, %s1128_s19  ;;  %p1134_p7 = scmp.lt.s32.totalorder %s1128_s19, %s1128_s19 }
  0x10   :  { %p1135_p8 = por %p1134_p7, %p1133_p6 }
  0x12   :  { %p1136_p9 = pnand %p1135_p8, %p1129_p5 }
  0x14   :  { %1139 = shalt.err (!%p1136_p9)
}
  0x15   :  { %s1188_s20 = smov 128   ;;  %s1189_s21 = smov 8  }
  0x16   :  { %22 = dma.hbm_to_vmem [thread:$0]  %s1354_s0, 1024, %s17_s15, [#allocation5], %s1188_s20, %s1188_s20, %s1189_s21  }
  0x17   :  { %s1190_s24 = smov [#allocation9]  }
  0x18   :  { %s38_s25 = sshll.u32 %s1190_s24, 4  ;;  %s39_s25 = int_to_ptr.vmem [resolvable:$true] %s38_s25 }
  0x19   :  { %s1148_s26 = scalar_lea.vmem %s39_s25, 256  ;;  %p1153_p11 = scmp.lt.s32.totalorder %s39_s25, %s39_s25 }
  0x1a   :  { %p1149_p10 = scmp.ne.s32.totalorder %s39_s25, %s1148_s26  ;;  %p1154_p12 = scmp.lt.s32.totalorder %s1148_s26, %s1148_s26 }
  0x1c   :  { %p1155_p13 = por %p1154_p12, %p1153_p11 }
  0x1e   :  { %p1156_p0 = pnand %p1155_p13, %p1149_p10 }
  0x20   :  { %1159 = shalt.err (!%p1156_p0)
}
  0x21   :  { %s1191_s1 = smov 64   ;;  %s1192_s27 = smov 4  }
  0x22   :  { %44 = dma.hbm_to_vmem [thread:$0]  %s1356_s2, 256, %s39_s25, [#allocation8], %s1191_s1, %s1191_s1, %s1192_s27  }
  0x23   :  { %1180 = dma.done.wait [#allocation5], 1024  }
  0x24   :  { %1181 = vsyncadd [#allocation5], 4294966272 }
  0x25   :  { %1182 = dma.done.wait [#allocation8], 384  }
  0x26   :  { %1183 = vsyncadd [#allocation8], 4294966912  ;;  %vm60_vm0 = vcmask 261120   ;;  %v1193_v0 = vmov 0.0   ;;  %vm1194_vm1 = vmmov 0   ;;  %v1020_v1 = vld [vmem:[#allocation9 + $0x8] sm:$0xff]  }
  0x27   :  { %944 = vmatprep.subr.bf16.mxu0 %v1193_v0  ;;  %948 = vmatprep.mubr.msk.bf16.mxu0 %vm1194_vm1, %v1193_v0  ;;  %62 = vst.msk [vmem:[#allocation3] sm:$0xff] %vm60_vm0, %v1193_v0  ;;  %v1021_v2 = vld [vmem:[#allocation9] sm:$0xff]   ;;  %v59_v3 = vld [vmem:[#allocation7] sm:$0xff]  ;;  %s1195_s0 = smov 32   ;;  %v1022_v24 = vld [vmem:[#allocation9 + $0x8] sm:$0xff]   ;;  %vm163_vm2 = vcmask 257024  }
  0x28   :  { %952 = vmatprep.subr.bf16.mxu1 %v1193_v0  ;;  %956 = vmatprep.mubr.msk.bf16.mxu1 %vm1194_vm1, %v1193_v0  ;;  %61 = vst.msk [vmem:[#allocation2] sm:$0xff] %vm60_vm0, %v59_v3  ;;  %v65_v6 = vld [vmem:[#allocation4] sm:$0xff]  ;;  %v1023_v25 = vld [vmem:[#allocation9] sm:$0xff]   ;;  %v1024_v47 = vld [vmem:[#allocation9 + $0x8] sm:$0xff]   ;;  %s1196_s2 = smov 96   ;;  %s1197_s30 = smov [#allocation10]  }
  0x29   :  { %945 = vmatpush3.bf16.msra.mxu0 %v1020_v1  ;;  %953 = vmatpush3.bf16.msra.mxu1 %v1022_v24  ;;  %v166_v31 = vld [vmem:[#allocation4 + $0x8] sm:$0xff]  ;;  %v263_v54 = vld [vmem:[#allocation4 + $0x10] sm:$0xff]  ;;  %s859_s4 = sshll.u32 %s1197_s30, 4  ;;  %s860_s4 = int_to_ptr.vmem [resolvable:$true] %s859_s4 }
  0x2a   :  { %946 = vmatprep.subr.bf16.mxu0 %v1193_v0  ;;  %954 = vmatprep.subr.bf16.mxu1 %v1193_v0  ;;  %v1025_v48 = vld [vmem:[#allocation9] sm:$0xff]   ;;  %s1160_s5 = scalar_lea.vmem %s860_s4, 512  ;;  %p1165_p2 = scmp.lt.s32.totalorder %s860_s4, %s860_s4 }
  0x2b   :  { %p1161_p1 = scmp.ne.s32.totalorder %s860_s4, %s1160_s5  ;;  %p1166_p3 = scmp.lt.s32.totalorder %s1160_s5, %s1160_s5 }
  0x2d   :  { %947 = vmatpush3.bf16.msra.mxu0 %v1021_v2  ;;  %955 = vmatpush3.bf16.msra.mxu1 %v1023_v25  ;;  %p1167_p4 = por %p1166_p3, %p1165_p2 }
  0x2e   :  { %960 = vmatprep.subr.bf16.mxu0 %v1193_v0  ;;  %v64_v13 = vld [vmem:[#allocation3] sm:$0xff]  ;;  %968 = vmatprep.subr.bf16.mxu1 %v1193_v0 }
  0x2f   :  { %v63_v4 = vld [vmem:[#allocation2] sm:$0xff]  ;;  %p1168_p5 = pnand %p1167_p4, %p1161_p1 }
  0x30   :  { %v66_v5 = vpack.c.bf16 %v63_v4, %v63_v4 }
  0x32   :  { %949 = vmatmul.mubr.msk.bf16.vlgmr.msra.gmra.mxu0 %vm60_vm0, %v66_v5 }
  0x33   :  { %964 = vmatprep.mubr.msk.bf16.mxu0 %vm1194_vm1, %v1193_v0  ;;  %961 = vmatpush3.bf16.msra.mxu0 %v1024_v47 }
  0x34   :  { %962 = vmatprep.subr.bf16.mxu0 %v1193_v0 }
  0x37   :  { %963 = vmatpush3.bf16.msra.mxu0 %v1025_v48 }
  0x38   :  { %976 = vmatprep.subr.bf16.mxu0 %v1193_v0 }
  0xf2   :  { %v121_v7 = vpop.f32.mrf.mxu0 }
  0xf3   :  { %v127_v8 = vadd.f32 %v121_v7, %v65_v6  ;;  %v1026_v7 = vld [vmem:[#allocation9 + $0x8] sm:$0xff]  }
  0xf4   :  { %v950_v9 = vpop.f32.mrf.mxu0 }
  0xf5   :  { %1036 = vtanh.f32 %v127_v8  ;;  %v875_v14 = vmul.f32 -1.442695, %v127_v8  ;;  %v1027_v8 = vld [vmem:[#allocation9] sm:$0xff]  }
  0xf6   :  { %v124_v10 = vpop.f32.mrf.mxu0 }
  0xf7   :  { %1038 = vpow2.f32 %v875_v14  ;;  %v360_v14 = vld [vmem:[#allocation4 + $0x18] sm:$0xff] }
  0xf8   :  { %v951_v11 = vpop.f32.mrf.mxu0 }
 0x102   :  { %v1037_v12 = vpop.eup %1036 }
 0x103   :  { %141 = vrot.lane.b32.xlu0 %v1037_v12, %s1191_s1 }
 0x104   :  { %v1039_v15 = vpop.eup %1038 }
 0x105   :  { %v131_v16 = vadd.f32 1.0, %v1039_v15 }
 0x107   :  { %136 = vrot.lane.b32.xlu0 %v64_v13, %s1195_s0  ;;  %1040 = vrcp.f32 %v131_v16 }
 0x114   :  { %v1041_v17 = vpop.eup %1040 }
 0x175   :  { %v142_v18 = vpop.permute.xlu0 %141 }
 0x176   :  { %v144_v19 = vmul.f32 %v1041_v17, %v142_v18 }
 0x178   :  { %146 = vrot.lane.b32.xlu1 %v144_v19, %s1195_s0 }
 0x179   :  { %v137_v20 = vpop.permute.xlu0 %136 }
 0x17a   :  { %v139_v21 = vmul.f32 %v1041_v17, %v137_v20 }
 0x1ea   :  { %v147_v22 = vpop.permute.xlu1 %146 }
 0x1eb   :  { %v149_v23 = vadd.f32 %v147_v22, %v139_v21 }
 0x1ed   :  { %1042 = vtanh.f32 %v149_v23 }
 0x1fa   :  { %v1043_v26 = vpop.eup %1042 }
 0x1fb   :  { %152 = vrot.lane.b32.xlu1 %v1043_v26, %s1191_s1 }
 0x26d   :  { %v153_v27 = vpop.permute.xlu1 %152 }
 0x26e   :  { %v155_v28 = vmul.f32 %v1041_v17, %v153_v27 }
 0x270   :  { %v1250_v29 = vpack.c.bf16 %v155_v28, %v155_v28 }
 0x272   :  { %171 = vrot.lane.b32.xlu0 %v1250_v29, %s1195_s0 }
 0x2e4   :  { %v172_v30 = vpop.permute.xlu0 %171 }
 0x2e5   :  { %957 = vmatmul.mubr.msk.bf16.vlgmr.msra.gmra.mxu1 %vm60_vm0, %v172_v30 }
 0x2e6   :  { %972 = vmatprep.mubr.msk.bf16.mxu1 %vm1194_vm1, %v1193_v0  ;;  %969 = vmatpush3.bf16.msra.mxu1 %v1026_v7 }
 0x2e7   :  { %970 = vmatprep.subr.bf16.mxu1 %v1193_v0 }
 0x2ea   :  { %971 = vmatpush3.bf16.msra.mxu1 %v1027_v8 }
 0x2eb   :  { %984 = vmatprep.subr.bf16.mxu1 %v1193_v0 }
 0x3a5   :  { %v222_v32 = vpop.f32.mrf.mxu1 }
 0x3a6   :  { %v228_v33 = vadd.f32 %v222_v32, %v166_v31  ;;  %v1028_v31 = vld [vmem:[#allocation9 + $0x8] sm:$0xff]   ;;  %v1029_v32 = vld [vmem:[#allocation9] sm:$0xff]  }
 0x3a7   :  { %v958_v34 = vpop.f32.mrf.mxu1 }
 0x3a8   :  { %1044 = vtanh.f32 %v228_v33  ;;  %v880_v38 = vmul.f32 -1.442695, %v228_v33 }
 0x3a9   :  { %v225_v35 = vpop.f32.mrf.mxu1 }
 0x3aa   :  { %1046 = vpow2.f32 %v880_v38  ;;  %v457_v38 = vld [vmem:[#allocation4 + $0x20] sm:$0xff] }
 0x3ab   :  { %v959_v36 = vpop.f32.mrf.mxu1 }
 0x3b5   :  { %v1045_v37 = vpop.eup %1044 }
 0x3b6   :  { %238 = vrot.lane.b32.xlu1 %v1045_v37, %s1191_s1 }
 0x3b7   :  { %v1047_v39 = vpop.eup %1046 }
 0x3b8   :  { %v232_v40 = vadd.f32 1.0, %v1047_v39 }
 0x3ba   :  { %1048 = vrcp.f32 %v232_v40 }
 0x3c7   :  { %v1049_v41 = vpop.eup %1048 }
 0x3c8   :  { %v236_v44 = vmul.f32 %v1049_v41, %v149_v23 }
 0x428   :  { %v239_v42 = vpop.permute.xlu1 %238 }
 0x429   :  { %v241_v43 = vmul.f32 %v1049_v41, %v239_v42 }
 0x42b   :  { %243 = vrot.lane.b32.xlu0 %v241_v43, %s1195_s0 }
 0x49d   :  { %v244_v45 = vpop.permute.xlu0 %243 }
 0x49e   :  { %v246_v46 = vadd.f32 %v244_v45, %v236_v44 }
 0x4a0   :  { %1050 = vtanh.f32 %v246_v46 }
 0x4ad   :  { %v1051_v49 = vpop.eup %1050 }
 0x4ae   :  { %249 = vrot.lane.b32.xlu1 %v1051_v49, %s1191_s1 }
 0x520   :  { %v250_v50 = vpop.permute.xlu1 %249 }
 0x521   :  { %v252_v51 = vmul.f32 %v1049_v41, %v250_v50 }
 0x523   :  { %v1262_v52 = vpack.c.bf16 %v252_v51, %v252_v51 }
 0x525   :  { %268 = vrot.lane.b32.xlu0 %v1262_v52, %s1195_s0 }
 0x597   :  { %v269_v53 = vpop.permute.xlu0 %268 }
 0x598   :  { %965 = vmatmul.mubr.msk.bf16.vlgmr.msra.gmra.mxu0 %vm60_vm0, %v269_v53 }
 0x599   :  { %980 = vmatprep.mubr.msk.bf16.mxu0 %vm1194_vm1, %v1193_v0  ;;  %977 = vmatpush3.bf16.msra.mxu0 %v1028_v31 }
 0x59a   :  { %978 = vmatprep.subr.bf16.mxu0 %v1193_v0 }
 0x59d   :  { %979 = vmatpush3.bf16.msra.mxu0 %v1029_v32 }
 0x59e   :  { %992 = vmatprep.subr.bf16.mxu0 %v1193_v0 }
 0x658   :  { %v319_v55 = vpop.f32.mrf.mxu0 }
 0x659   :  { %v325_v56 = vadd.f32 %v319_v55, %v263_v54  ;;  %v1030_v55 = vld [vmem:[#allocation9 + $0x8] sm:$0xff]  }
 0x65a   :  { %v966_v57 = vpop.f32.mrf.mxu0 }
 0x65b   :  { %1052 = vtanh.f32 %v325_v56  ;;  %v885_v61 = vmul.f32 -1.442695, %v325_v56  ;;  %v1031_v56 = vld [vmem:[#allocation9] sm:$0xff]  }
 0x65c   :  { %v322_v58 = vpop.f32.mrf.mxu0 }
 0x65d   :  { %1054 = vpow2.f32 %v885_v61 }
 0x65e   :  { %v967_v59 = vpop.f32.mrf.mxu0 }
 0x668   :  { %v1053_v60 = vpop.eup %1052 }
 0x669   :  { %335 = vrot.lane.b32.xlu1 %v1053_v60, %s1191_s1 }
 0x66a   :  { %v1055_v62 = vpop.eup %1054 }
 0x66b   :  { %v329_v63 = vadd.f32 1.0, %v1055_v62  ;;  %v554_v62 = vld [vmem:[#allocation4 + $0x28] sm:$0xff] }
 0x66d   :  { %1056 = vrcp.f32 %v329_v63 }
 0x67a   :  { %v1057_v1 = vpop.eup %1056 }
 0x67b   :  { %v333_v4 = vmul.f32 %v1057_v1, %v246_v46 }
 0x6db   :  { %v336_v2 = vpop.permute.xlu1 %335 }
 0x6dc   :  { %v338_v3 = vmul.f32 %v1057_v1, %v336_v2 }
 0x6de   :  { %340 = vrot.lane.b32.xlu0 %v338_v3, %s1195_s0 }
 0x750   :  { %v341_v5 = vpop.permute.xlu0 %340 }
 0x751   :  { %v343_v6 = vadd.f32 %v341_v5, %v333_v4 }
 0x753   :  { %1058 = vtanh.f32 %v343_v6 }
 0x760   :  { %v1059_v9 = vpop.eup %1058 }
 0x761   :  { %346 = vrot.lane.b32.xlu1 %v1059_v9, %s1191_s1 }
 0x7d3   :  { %v347_v10 = vpop.permute.xlu1 %346 }
 0x7d4   :  { %v349_v11 = vmul.f32 %v1057_v1, %v347_v10 }
 0x7d6   :  { %v1274_v12 = vpack.c.bf16 %v349_v11, %v349_v11 }
 0x7d8   :  { %365 = vrot.lane.b32.xlu0 %v1274_v12, %s1195_s0 }
 0x84a   :  { %v366_v13 = vpop.permute.xlu0 %365 }
 0x84b   :  { %973 = vmatmul.mubr.msk.bf16.vlgmr.msra.gmra.mxu1 %vm60_vm0, %v366_v13 }
 0x84c   :  { %988 = vmatprep.mubr.msk.bf16.mxu1 %vm1194_vm1, %v1193_v0  ;;  %985 = vmatpush3.bf16.msra.mxu1 %v1030_v55 }
 0x84d   :  { %986 = vmatprep.subr.bf16.mxu1 %v1193_v0 }
 0x850   :  { %987 = vmatpush3.bf16.msra.mxu1 %v1031_v56 }
 0x851   :  { %1000 = vmatprep.subr.bf16.mxu1 %v1193_v0 }
 0x90b   :  { %v416_v15 = vpop.f32.mrf.mxu1 }
 0x90c   :  { %v422_v16 = vadd.f32 %v416_v15, %v360_v14 }
 0x90d   :  { %v974_v17 = vpop.f32.mrf.mxu1 }
 0x90e   :  { %1060 = vtanh.f32 %v422_v16  ;;  %v890_v21 = vmul.f32 -1.442695, %v422_v16  ;;  %v1032_v16 = vld [vmem:[#allocation9 + $0x8] sm:$0xff]   ;;  %v1033_v17 = vld [vmem:[#allocation9] sm:$0xff]  }
 0x90f   :  { %v419_v18 = vpop.f32.mrf.mxu1 }
 0x910   :  { %1062 = vpow2.f32 %v890_v21 }
 0x911   :  { %v975_v19 = vpop.f32.mrf.mxu1 }
 0x91b   :  { %v1061_v20 = vpop.eup %1060 }
 0x91c   :  { %432 = vrot.lane.b32.xlu1 %v1061_v20, %s1191_s1 }
 0x91d   :  { %v1063_v22 = vpop.eup %1062 }
 0x91e   :  { %v426_v23 = vadd.f32 1.0, %v1063_v22 }
 0x920   :  { %1064 = vrcp.f32 %v426_v23  ;;  %v651_v23 = vld [vmem:[#allocation4 + $0x30] sm:$0xff] }
 0x92d   :  { %v1065_v24 = vpop.eup %1064 }
 0x92e   :  { %v430_v27 = vmul.f32 %v1065_v24, %v343_v6 }
 0x98e   :  { %v433_v25 = vpop.permute.xlu1 %432 }
 0x98f   :  { %v435_v26 = vmul.f32 %v1065_v24, %v433_v25 }
 0x991   :  { %437 = vrot.lane.b32.xlu0 %v435_v26, %s1195_s0 }
 0xa03   :  { %v438_v28 = vpop.permute.xlu0 %437 }
 0xa04   :  { %v440_v30 = vadd.f32 %v438_v28, %v430_v27 }
 0xa06   :  { %1066 = vtanh.f32 %v440_v30 }
 0xa13   :  { %v1067_v33 = vpop.eup %1066 }
 0xa14   :  { %443 = vrot.lane.b32.xlu1 %v1067_v33, %s1191_s1 }
 0xa86   :  { %v444_v34 = vpop.permute.xlu1 %443 }
 0xa87   :  { %v446_v35 = vmul.f32 %v1065_v24, %v444_v34 }
 0xa89   :  { %v1286_v36 = vpack.c.bf16 %v446_v35, %v446_v35 }
 0xa8b   :  { %462 = vrot.lane.b32.xlu0 %v1286_v36, %s1195_s0 }
 0xafd   :  { %v463_v37 = vpop.permute.xlu0 %462 }
 0xafe   :  { %981 = vmatmul.mubr.msk.bf16.vlgmr.msra.gmra.mxu0 %vm60_vm0, %v463_v37 }
 0xaff   :  { %996 = vmatprep.mubr.msk.bf16.mxu0 %vm1194_vm1, %v1193_v0  ;;  %993 = vmatpush3.bf16.msra.mxu0 %v1032_v16 }
 0xb00   :  { %994 = vmatprep.subr.bf16.mxu0 %v1193_v0 }
 0xb03   :  { %995 = vmatpush3.bf16.msra.mxu0 %v1033_v17 }
 0xbbe   :  { %v513_v39 = vpop.f32.mrf.mxu0 }
 0xbbf   :  { %v519_v40 = vadd.f32 %v513_v39, %v457_v38 }
 0xbc0   :  { %v982_v41 = vpop.f32.mrf.mxu0 }
 0xbc1   :  { %1068 = vtanh.f32 %v519_v40  ;;  %v895_v45 = vmul.f32 -1.442695, %v519_v40  ;;  %v1034_v41 = vld [vmem:[#allocation9 + $0x8] sm:$0xff]  }
 0xbc2   :  { %v516_v42 = vpop.f32.mrf.mxu0 }
 0xbc3   :  { %1070 = vpow2.f32 %v895_v45  ;;  %v1035_v42 = vld [vmem:[#allocation9] sm:$0xff]  }
 0xbc4   :  { %v983_v43 = vpop.f32.mrf.mxu0 }
 0xbce   :  { %v1069_v44 = vpop.eup %1068 }
 0xbcf   :  { %529 = vrot.lane.b32.xlu1 %v1069_v44, %s1191_s1 }
 0xbd0   :  { %v1071_v46 = vpop.eup %1070 }
 0xbd1   :  { %v523_v47 = vadd.f32 1.0, %v1071_v46 }
 0xbd3   :  { %1072 = vrcp.f32 %v523_v47 }
 0xbe0   :  { %v1073_v48 = vpop.eup %1072 }
 0xbe1   :  { %v527_v51 = vmul.f32 %v1073_v48, %v440_v30 }
 0xc41   :  { %v530_v49 = vpop.permute.xlu1 %529 }
 0xc42   :  { %v532_v50 = vmul.f32 %v1073_v48, %v530_v49 }
 0xc44   :  { %534 = vrot.lane.b32.xlu0 %v532_v50, %s1195_s0 }
 0xcb6   :  { %v535_v53 = vpop.permute.xlu0 %534 }
 0xcb7   :  { %v537_v54 = vadd.f32 %v535_v53, %v527_v51 }
 0xcb9   :  { %1074 = vtanh.f32 %v537_v54 }
 0xcc6   :  { %v1075_v57 = vpop.eup %1074 }
 0xcc7   :  { %540 = vrot.lane.b32.xlu1 %v1075_v57, %s1191_s1 }
 0xd39   :  { %v541_v58 = vpop.permute.xlu1 %540 }
 0xd3a   :  { %v543_v59 = vmul.f32 %v1073_v48, %v541_v58  ;;  %v748_v48 = vld [vmem:[#allocation4 + $0x38] sm:$0xff] }
 0xd3c   :  { %v1298_v60 = vpack.c.bf16 %v543_v59, %v543_v59 }
 0xd3e   :  { %559 = vrot.lane.b32.xlu0 %v1298_v60, %s1195_s0 }
 0xdb0   :  { %v560_v61 = vpop.permute.xlu0 %559 }
 0xdb1   :  { %989 = vmatmul.mubr.msk.bf16.vlgmr.msra.gmra.mxu1 %vm60_vm0, %v560_v61 }
 0xdb2   :  { %1004 = vmatprep.mubr.msk.bf16.mxu1 %vm1194_vm1, %v1193_v0  ;;  %1001 = vmatpush3.bf16.msra.mxu1 %v1034_v41 }
 0xdb3   :  { %1002 = vmatprep.subr.bf16.mxu1 %v1193_v0 }
 0xdb6   :  { %1003 = vmatpush3.bf16.msra.mxu1 %v1035_v42 }
 0xe71   :  { %v610_v63 = vpop.f32.mrf.mxu1 }
 0xe72   :  { %v616_v1 = vadd.f32 %v610_v63, %v554_v62 }
 0xe73   :  { %v990_v2 = vpop.f32.mrf.mxu1 }
 0xe74   :  { %1076 = vtanh.f32 %v616_v1  ;;  %v900_v6 = vmul.f32 -1.442695, %v616_v1 }
 0xe75   :  { %v613_v3 = vpop.f32.mrf.mxu1 }
 0xe76   :  { %1078 = vpow2.f32 %v900_v6 }
 0xe77   :  { %v991_v4 = vpop.f32.mrf.mxu1 }
 0xe81   :  { %v1077_v5 = vpop.eup %1076 }
 0xe82   :  { %626 = vrot.lane.b32.xlu1 %v1077_v5, %s1191_s1 }
 0xe83   :  { %v1079_v7 = vpop.eup %1078 }
 0xe84   :  { %v620_v8 = vadd.f32 1.0, %v1079_v7 }
 0xe86   :  { %1080 = vrcp.f32 %v620_v8 }
 0xe93   :  { %v1081_v9 = vpop.eup %1080 }
 0xe94   :  { %v624_v13 = vmul.f32 %v1081_v9, %v537_v54 }
 0xef4   :  { %v627_v10 = vpop.permute.xlu1 %626 }
 0xef5   :  { %v629_v11 = vmul.f32 %v1081_v9, %v627_v10 }
 0xef7   :  { %631 = vrot.lane.b32.xlu0 %v629_v11, %s1195_s0 }
 0xf69   :  { %v632_v14 = vpop.permute.xlu0 %631 }
 0xf6a   :  { %v634_v15 = vadd.f32 %v632_v14, %v624_v13 }
 0xf6c   :  { %1082 = vtanh.f32 %v634_v15 }
 0xf79   :  { %v1083_v18 = vpop.eup %1082 }
 0xf7a   :  { %637 = vrot.lane.b32.xlu1 %v1083_v18, %s1191_s1 }
 0xfec   :  { %v638_v19 = vpop.permute.xlu1 %637 }
 0xfed   :  { %v640_v20 = vmul.f32 %v1081_v9, %v638_v19 }
 0xfef   :  { %v1309_v21 = vpack.c.bf16 %v640_v20, %v640_v20 }
 0xff1   :  { %656 = vrot.lane.b32.xlu0 %v1309_v21, %s1195_s0 }
0x1063   :  { %v657_v22 = vpop.permute.xlu0 %656 }
0x1064   :  { %997 = vmatmul.mubr.msk.bf16.vlgmr.msra.gmra.mxu0 %vm60_vm0, %v657_v22 }
0x1124   :  { %v707_v24 = vpop.f32.mrf.mxu0 }
0x1125   :  { %v713_v25 = vadd.f32 %v707_v24, %v651_v23 }
0x1126   :  { %v998_v26 = vpop.f32.mrf.mxu0 }
0x1127   :  { %1084 = vtanh.f32 %v713_v25  ;;  %v905_v31 = vmul.f32 -1.442695, %v713_v25 }
0x1128   :  { %v710_v27 = vpop.f32.mrf.mxu0 }
0x1129   :  { %1086 = vpow2.f32 %v905_v31 }
0x112a   :  { %v999_v28 = vpop.f32.mrf.mxu0 }
0x1134   :  { %v1085_v30 = vpop.eup %1084 }
0x1135   :  { %723 = vrot.lane.b32.xlu1 %v1085_v30, %s1191_s1 }
0x1136   :  { %v1087_v32 = vpop.eup %1086 }
0x1137   :  { %v717_v33 = vadd.f32 1.0, %v1087_v32 }
0x1139   :  { %1088 = vrcp.f32 %v717_v33 }
0x1146   :  { %v1089_v34 = vpop.eup %1088 }
0x1147   :  { %v721_v38 = vmul.f32 %v1089_v34, %v634_v15 }
0x11a7   :  { %v724_v35 = vpop.permute.xlu1 %723 }
0x11a8   :  { %v726_v37 = vmul.f32 %v1089_v34, %v724_v35 }
0x11aa   :  { %728 = vrot.lane.b32.xlu0 %v726_v37, %s1195_s0 }
0x121c   :  { %v729_v39 = vpop.permute.xlu0 %728 }
0x121d   :  { %v731_v40 = vadd.f32 %v729_v39, %v721_v38 }
0x121f   :  { %1090 = vtanh.f32 %v731_v40 }
0x122c   :  { %v1091_v43 = vpop.eup %1090 }
0x122d   :  { %734 = vrot.lane.b32.xlu1 %v1091_v43, %s1191_s1 }
0x129f   :  { %v735_v44 = vpop.permute.xlu1 %734 }
0x12a0   :  { %v737_v45 = vmul.f32 %v1089_v34, %v735_v44 }
0x12a2   :  { %v738_v46 = vpack.c.bf16 %v737_v45, %v737_v45 }
0x12a4   :  { %753 = vrot.lane.b32.xlu0 %v738_v46, %s1195_s0 }
0x1316   :  { %v754_v47 = vpop.permute.xlu0 %753 }
0x1317   :  { %1005 = vmatmul.mubr.msk.bf16.vlgmr.msra.gmra.mxu1 %vm60_vm0, %v754_v47 }
0x13d7   :  { %v804_v49 = vpop.f32.mrf.mxu1 }
0x13d8   :  { %v810_v50 = vadd.f32 %v804_v49, %v748_v48 }
0x13d9   :  { %v1006_v51 = vpop.f32.mrf.mxu1 }
0x13da   :  { %1092 = vtanh.f32 %v810_v50  ;;  %v910_v55 = vmul.f32 -1.442695, %v810_v50 }
0x13db   :  { %v807_v53 = vpop.f32.mrf.mxu1 }
0x13dc   :  { %1094 = vpow2.f32 %v910_v55 }
0x13dd   :  { %v1007_v54 = vpop.f32.mrf.mxu1 }
0x13e7   :  { %v1093_v0 = vpop.eup %1092 }
0x13e8   :  { %820 = vrot.lane.b32.xlu1 %v1093_v0, %s1191_s1 }
0x13e9   :  { %v1095_v56 = vpop.eup %1094 }
0x13ea   :  { %v814_v57 = vadd.f32 1.0, %v1095_v56 }
0x13ec   :  { %1096 = vrcp.f32 %v814_v57 }
0x13f9   :  { %v1097_v58 = vpop.eup %1096 }
0x13fa   :  { %v818_v62 = vmul.f32 %v1097_v58, %v731_v40 }
0x145a   :  { %v821_v59 = vpop.permute.xlu1 %820 }
0x145b   :  { %v823_v61 = vmul.f32 %v1097_v58, %v821_v59 }
0x145d   :  { %825 = vrot.lane.b32.xlu0 %v823_v61, %s1195_s0 }
0x1461   :  { %160 = vrot.lane.b32.xlu0 %v1250_v29, %s1195_s0 }
0x1465   :  { %354 = vrot.lane.b32.xlu0 %v1274_v12, %s1195_s0 }
0x1469   :  { %548 = vrot.lane.b32.xlu0 %v1298_v60, %s1195_s0 }
0x146d   :  { %742 = vrot.lane.b32.xlu0 %v738_v46, %s1195_s0 }
0x14cf   :  { %v826_v63 = vpop.permute.xlu0 %825 }
0x14d0   :  { %v828_v1 = vadd.f32 %v826_v63, %v818_v62 }
0x14d2   :  { %1098 = vtanh.f32 %v828_v1 }
0x14d3   :  { %v161_v2 = vpop.permute.xlu0 %160 }
0x14d4   :  { %164 = vst.msk [vmem:[#allocation10] sm:$0xf] %vm163_vm2, %v161_v2 }
0x14d7   :  { %v355_v3 = vpop.permute.xlu0 %354 }
0x14d8   :  { %358 = vst.msk [vmem:[#allocation10 + $0x8] sm:$0xf] %vm163_vm2, %v355_v3 }
0x14db   :  { %v549_v29 = vpop.permute.xlu0 %548 }
0x14dc   :  { %552 = vst.msk [vmem:[#allocation10 + $0x10] sm:$0xf] %vm163_vm2, %v549_v29 }
0x14df   :  { %v1099_v12 = vpop.eup %1098  ;;  %v743_v4 = vpop.permute.xlu0 %742 }
0x14e0   :  { %746 = vst.msk [vmem:[#allocation10 + $0x18] sm:$0xf] %vm163_vm2, %v743_v4  ;;  %831 = vrot.lane.b32.xlu1 %v1099_v12, %s1191_s1 }
0x14e4   :  { %257 = vrot.lane.b32.xlu1 %v1262_v52, %s1195_s0 }
0x14e8   :  { %451 = vrot.lane.b32.xlu1 %v1286_v36, %s1195_s0 }
0x14ec   :  { %645 = vrot.lane.b32.xlu1 %v1309_v21, %s1195_s0 }
0x1552   :  { %v832_v60 = vpop.permute.xlu1 %831 }
0x1553   :  { %v834_v5 = vmul.f32 %v1097_v58, %v832_v60 }
0x1555   :  { %v919_v6 = vpack.c.bf16 %v834_v5, %v834_v5  ;;  %845 = vrot.lane.b32.xlu0 %v834_v5, %s1195_s0 }
0x1556   :  { %v258_v7 = vpop.permute.xlu1 %257 }
0x1557   :  { %261 = vst.msk [vmem:[#allocation10 + $0x4] sm:$0xf] %vm163_vm2, %v258_v7  ;;  %839 = vrot.lane.b32.xlu1 %v919_v6, %s1195_s0 }
0x155a   :  { %v452_v8 = vpop.permute.xlu1 %451 }
0x155b   :  { %455 = vst.msk [vmem:[#allocation10 + $0xc] sm:$0xf] %vm163_vm2, %v452_v8  ;;  %850 = vrot.lane.b32.xlu1 %v828_v1, %s1196_s2 }
0x155e   :  { %v646_v52 = vpop.permute.xlu1 %645 }
0x155f   :  { %649 = vst.msk [vmem:[#allocation10 + $0x14] sm:$0xf] %vm163_vm2, %v646_v52 }
0x15c7   :  { %v846_v36 = vpop.permute.xlu0 %845 }
0x15c8   :  { %848 = vst.msk [vmem:[#allocation2] sm:$0xff] %vm60_vm0, %v846_v36 }
0x15c9   :  { %v840_v9 = vpop.permute.xlu1 %839 }
0x15ca   :  { %843 = vst.msk [vmem:[#allocation10 + $0x1c] sm:$0xf] %vm163_vm2, %v840_v9 }
0x15cb   :  { %1171 = shalt.err (!%p1168_p5)
}
0x15cc   :  { %865 = dma.vmem_to_hbm [thread:$0]  %s860_s4, 512, %s1357_s3, [#allocation6], %s1191_s1, %s1191_s1, %s1192_s27  }
0x15cd   :  { %v851_v10 = vpop.permute.xlu1 %850 }
0x15ce   :  { %853 = vst.msk [vmem:[#allocation3] sm:$0xff] %vm60_vm0, %v851_v10 }
0x15cf   :  { %1184 = dma.done.wait [#allocation6], 512  }
0x15d0   :  { %1185 = vsyncadd [#allocation6], 4294966784 }
0x15d1   :  { %869 = vsyncpa [#allocation5], 1 }
0x15d2   :  { %870 = vsyncpa [#allocation8], 1 }
0x15d3   :  { %871 = vsyncpa [#allocation6], 1 }

</bundles_post_ra>
